<compile_context>
chip_gen: v6e
topology: v6e:2x2x1
jax: 0.10.0
libtpu: 0.0.40
codegen_flags: <defaults>
</compile_context>

<pallas_src>
import functools

import jax
import jax.numpy as jnp
from jax import lax
from jax.experimental import pallas as pl
from jax.experimental.pallas import tpu as pltpu

# ---------------------------------------------------------------- config ----
B = 2           # batch
S = 8           # sequence length
D_MODEL = 32    # embed dim
N_HEAD = 4      # attention heads
D_HEAD = D_MODEL // N_HEAD
D_FF = 64       # feedforward dim
NUM_LAYERS = 2  # stacked TransformerEncoderLayer forwards
EPS = 1e-5
DTYPE = jnp.float32
ATTN_SCALE = 1.0 / (D_HEAD ** 0.5)

# rows of the packed per-layer vector table [NVEC, D_MODEL]
_BV, _BO, _G1, _BE1, _G2, _BE2, _B2 = range(7)
_NVEC = 8  # 7 used rows + 1 pad row (sublane-aligned)


# ------------------------------------------------------------- kernel -------
def _layernorm(x, g, b):
    mu = jnp.mean(x, axis=-1, keepdims=True)
    var = jnp.mean((x - mu) ** 2, axis=-1, keepdims=True)
    return (x - mu) * lax.rsqrt(var + EPS) * g + b


def _encoder_kernel(*refs, with_bias, num_layers):
    """One grid step == one batch item through all encoder layers (static unroll)."""
    if with_bias:
        (x_ref, pos_ref, bias_ref,
         wqk_ref, bqk_ref, wvo_ref, w1_ref, w2_ref, vec_ref, b1_ref,
         out_ref) = refs
    else:
        (x_ref, pos_ref,
         wqk_ref, bqk_ref, wvo_ref, w1_ref, w2_ref, vec_ref, b1_ref,
         out_ref) = refs
        bias_ref = None

    x = x_ref[0].astype(jnp.float32)                     # [S, D]
    pos = pos_ref[0].astype(jnp.float32)                 # [S, D]
    bias = bias_ref[0].astype(jnp.float32) if with_bias else None   # [S, S]

    for l in range(num_layers):                          # static unroll
        wqk = wqk_ref[l].astype(jnp.float32)             # [D, 2D] (Wq*scale | Wk)
        bqk = bqk_ref[l].astype(jnp.float32)             # [1, 2D] (bq*scale | bk)
        wvo = wvo_ref[l].astype(jnp.float32)             # [2, D, D] (Wv, Wo)
        w1 = w1_ref[l].astype(jnp.float32)               # [D, F]
        w2 = w2_ref[l].astype(jnp.float32)               # [F, D]
        vec = vec_ref[l].astype(jnp.float32)             # [NVEC, D] packed biases/LN
        b1 = b1_ref[l].astype(jnp.float32)               # [1, F]
        wv, wo = wvo[0], wvo[1]

        def row(i):                                      # [1, D], broadcasts over rows
            return vec[i:i + 1, :]

        # ---- fused Q|K projection (one wide matmul) + V projection ---------
        qk_in = x + pos                                  # q = k = src + pos; value = src
        qk = jnp.dot(qk_in, wqk, preferred_element_type=jnp.float32) + bqk   # [S, 2D]
        v = jnp.dot(x, wv, preferred_element_type=jnp.float32) + row(_BV)    # [S, D]

        # ---- per-head attention; output projection accumulated per head ----
        # (no lane concat of head contexts: Wo is sublane-sliced instead)
        attn = None
        for h in range(N_HEAD):
            lo, hi = h * D_HEAD, (h + 1) * D_HEAD
            qh = qk[:, lo:hi]                            # [S, dh] (scale pre-folded)
            kh = qk[:, D_MODEL + lo:D_MODEL + hi]        # [S, dh]
            vh = v[:, lo:hi]                             # [S, dh]
            s = lax.dot_general(qh, kh, (((1,), (1,)), ((), ())),
                                preferred_element_type=jnp.float32)   # [S, S]
            if with_bias:
                s = s + bias
            m = jnp.max(s, axis=-1, keepdims=True)
            p = jnp.exp(s - m)
            p = p * pl.reciprocal(jnp.sum(p, axis=-1, keepdims=True), approx=True)
            ctx_h = jnp.dot(p, vh, preferred_element_type=jnp.float32)        # [S, dh]
            part = jnp.dot(ctx_h, wo[lo:hi, :],
                           preferred_element_type=jnp.float32)                # [S, D]
            attn = part if attn is None else attn + part
        attn = attn + row(_BO)

        # ---- residual + LN1, FFN, residual + LN2 ----------------------------
        h1 = _layernorm(x + attn, row(_G1), row(_BE1))
        f = jnp.maximum(jnp.dot(h1, w1, preferred_element_type=jnp.float32) + b1, 0.0)
        f = jnp.dot(f, w2, preferred_element_type=jnp.float32) + row(_B2)
        x = _layernorm(h1 + f, row(_G2), row(_BE2))

    out_ref[0] = x.astype(out_ref.dtype)


# ------------------------------------------------------------- wrappers -----
def build_attn_bias(src_mask, key_padding_mask, batch, seq, dtype=jnp.float32):
    """PyTorch-style masks -> additive [B, S, S] bias (-1e9 for masked)."""
    bias = jnp.zeros((batch, seq, seq), jnp.float32)
    if src_mask is not None:  # [S, S], bool or float additive
        if src_mask.dtype == jnp.bool_:
            m = jnp.where(src_mask, -1e9, 0.0)
        else:
            m = src_mask.astype(jnp.float32)
        bias = bias + m[None, :, :]
    if key_padding_mask is not None:  # [B, S] bool, True = pad
        bias = bias + jnp.where(key_padding_mask, -1e9, 0.0)[:, None, :]
    return bias.astype(dtype)


def stack_layer_params(layer_params, weight_dtype=jnp.bfloat16):
    """Pack per-layer weights into a handful of stacked arrays.

    Wq / bq carry the folded 1/sqrt(D_HEAD) attention scale, so they stay f32
    (the scaled values would not survive bf16 rounding losslessly).  Everything
    else is stored bf16 to halve HBM->VMEM DMA bytes and is cast back to f32
    inside the kernel (accumulation is always f32)."""
    wqk = jnp.stack([jnp.concatenate([p['wq'] * ATTN_SCALE, p['wk']], axis=1)
                     for p in layer_params]).astype(jnp.float32)            # [L, D, 2D]
    bqk = jnp.stack([jnp.concatenate([p['bq'] * ATTN_SCALE, p['bk']], axis=1)
                     for p in layer_params]).astype(jnp.float32)            # [L, 1, 2D]
    wvo = jnp.stack([jnp.stack([p['wv'], p['wo']], axis=0)
                     for p in layer_params]).astype(weight_dtype)           # [L, 2, D, D]
    w1 = jnp.stack([p['w1'] for p in layer_params]).astype(weight_dtype)    # [L, D, F]
    w2 = jnp.stack([p['w2'] for p in layer_params]).astype(weight_dtype)    # [L, F, D]
    b1 = jnp.stack([p['b1'] for p in layer_params]).astype(weight_dtype)    # [L, 1, F]
    pad = jnp.zeros((1, D_MODEL), jnp.float32)
    vec = jnp.stack([jnp.concatenate([p['bv'], p['bo'], p['g1'], p['be1'],
                                      p['g2'], p['be2'], p['b2'], pad], axis=0)
                     for p in layer_params]).astype(weight_dtype)           # [L, NVEC, D]
    return wqk, bqk, wvo, w1, w2, vec, b1


def transformer_encoder_layers(src, layer_params, src_mask=None,
                               src_key_padding_mask=None, pos=None):
    """len(layer_params) post-norm TransformerEncoderLayer forwards in one
    pallas_call: grid over batch ("parallel", feeds both v7x TensorCores),
    layers looped inside the kernel on the VMEM-resident activation."""
    num_layers = len(layer_params)
    bsz, seq, dm = src.shape
    assert (bsz, seq, dm) == (B, S, D_MODEL)

    pos_a = pos if pos is not None else jnp.zeros_like(src)
    pos_a = pos_a.astype(jnp.bfloat16)        # streamed bf16, cast back in-kernel
    wqk, bqk, wvo, w1s, w2s, vec, b1s = stack_layer_params(layer_params)

    with_bias = (src_mask is not None) or (src_key_padding_mask is not None)

    inputs = [src, pos_a]
    in_specs = [pl.BlockSpec((1, seq, dm), lambda b: (b, 0, 0)),
                pl.BlockSpec((1, seq, dm), lambda b: (b, 0, 0))]
    if with_bias:
        inputs.append(build_attn_bias(src_mask, src_key_padding_mask, bsz, seq,
                                      dtype=jnp.bfloat16))
        in_specs.append(pl.BlockSpec((1, seq, seq), lambda b: (b, 0, 0)))

    inputs += [wqk, bqk, wvo, w1s, w2s, vec, b1s]
    in_specs += [
        pl.BlockSpec((num_layers, dm, 2 * dm), lambda b: (0, 0, 0)),
        pl.BlockSpec((num_layers, 1, 2 * dm), lambda b: (0, 0, 0)),
        pl.BlockSpec((num_layers, 2, dm, dm), lambda b: (0, 0, 0, 0)),
        pl.BlockSpec((num_layers, dm, D_FF), lambda b: (0, 0, 0)),
        pl.BlockSpec((num_layers, D_FF, dm), lambda b: (0, 0, 0)),
        pl.BlockSpec((num_layers, _NVEC, dm), lambda b: (0, 0, 0)),
        pl.BlockSpec((num_layers, 1, D_FF), lambda b: (0, 0, 0)),
    ]

    # Advisory cost for XLA scheduling around the custom call.
    flops = num_layers * bsz * (
        2 * seq * dm * (2 * dm)                       # fused Q|K projection
        + 2 * 2 * seq * dm * dm                       # V proj + output proj
        + 2 * 2 * seq * dm * D_FF                     # FFN
        + 2 * 2 * N_HEAD * seq * seq * D_HEAD)        # scores + context
    transcendentals = num_layers * bsz * (N_HEAD * seq * seq + N_HEAD * seq + 2 * seq)
    bytes_accessed = (4 * 2 * bsz * seq * dm                       # src + out (f32)
                      + 2 * bsz * seq * dm                         # pos (bf16)
                      + (2 * bsz * seq * seq if with_bias else 0)  # bias (bf16)
                      + 4 * num_layers * (2 * dm * dm + 2 * dm)    # wqk + bqk (f32)
                      + 2 * num_layers * (2 * dm * dm + 2 * dm * D_FF
                                          + _NVEC * dm + D_FF))    # bf16 weights

    out = pl.pallas_call(
        functools.partial(_encoder_kernel, with_bias=with_bias,
                          num_layers=num_layers),
        grid=(bsz,),
        in_specs=in_specs,
        out_specs=pl.BlockSpec((1, seq, dm), lambda b: (b, 0, 0)),
        out_shape=jax.ShapeDtypeStruct((bsz, seq, dm), src.dtype),
        compiler_params=pltpu.CompilerParams(
            dimension_semantics=("parallel",)),   # one batch item per TensorCore
        cost_estimate=pl.CostEstimate(flops=flops,
                                      transcendentals=transcendentals,
                                      bytes_accessed=bytes_accessed),
    )(*inputs)
    return out


# ---------------------------------------------------- plain-JAX reference ---
def reference_layer(x, pos, bias, p):
    qk = x + pos
    q = qk @ p['wq'] + p['bq']
    k = qk @ p['wk'] + p['bk']
    v = x @ p['wv'] + p['bv']
    qh = q.reshape(B, S, N_HEAD, D_HEAD)
    kh = k.reshape(B, S, N_HEAD, D_HEAD)
    vh = v.reshape(B, S, N_HEAD, D_HEAD)
    s = jnp.einsum('bqhd,bkhd->bhqk', qh, kh) / (D_HEAD ** 0.5)
    if bias is not None:
        s = s + bias[:, None, :, :]
    pr = jax.nn.softmax(s, axis=-1)
    ctx = jnp.einsum('bhqk,bkhd->bqhd', pr, vh).reshape(B, S, D_MODEL)
    attn = ctx @ p['wo'] + p['bo']

    def ln(y, g, b_):
        mu = y.mean(-1, keepdims=True)
        var = ((y - mu) ** 2).mean(-1, keepdims=True)
        return (y - mu) / jnp.sqrt(var + EPS) * g + b_

    h1 = ln(x + attn, p['g1'], p['be1'])
    f = jnp.maximum(h1 @ p['w1'] + p['b1'], 0.0) @ p['w2'] + p['b2']
    return ln(h1 + f, p['g2'], p['be2'])


def reference_encoder(src, layer_params, bias=None, pos=None):
    pos = jnp.zeros_like(src) if pos is None else pos
    out = src
    for p in layer_params:
        out = reference_layer(out, pos, bias, p)
    return out


# ---------------------------------------------------------------- main ------
def _bf16_grid(x):
    # Pre-round to bf16-representable values so the kernel's bf16 HBM storage
    # of streamed weights/pos is lossless vs. the f32 reference.
    return x.astype(jnp.bfloat16).astype(DTYPE)


def init_layer_params(key):
    ks = jax.random.split(key, 16)
    n = lambda k, shp: _bf16_grid(0.02 * jax.random.normal(k, shp, DTYPE))
    g = lambda k, shp: _bf16_grid(1.0 + 0.02 * jax.random.normal(k, shp, DTYPE))
    return {
        'wq': n(ks[0], (D_MODEL, D_MODEL)), 'bq': n(ks[1], (1, D_MODEL)),
        'wk': n(ks[2], (D_MODEL, D_MODEL)), 'bk': n(ks[3], (1, D_MODEL)),
        'wv': n(ks[4], (D_MODEL, D_MODEL)), 'bv': n(ks[5], (1, D_MODEL)),
        'wo': n(ks[6], (D_MODEL, D_MODEL)), 'bo': n(ks[7], (1, D_MODEL)),
        'g1': g(ks[8], (1, D_MODEL)), 'be1': n(ks[9], (1, D_MODEL)),
        'g2': g(ks[10], (1, D_MODEL)), 'be2': n(ks[11], (1, D_MODEL)),
        'w1': n(ks[12], (D_MODEL, D_FF)), 'b1': n(ks[13], (1, D_FF)),
        'w2': n(ks[14], (D_FF, D_MODEL)), 'b2': n(ks[15], (1, D_MODEL)),
    }


if __name__ == "__main__":
    root = jax.random.PRNGKey(0)
    k_x, k_pos, k_w = jax.random.split(root, 3)

    src = jax.random.normal(k_x, (B, S, D_MODEL), DTYPE)
    pos = _bf16_grid(jax.random.normal(k_pos, (B, S, D_MODEL), DTYPE))

    # Distinct per-layer params so a wrong layer index in the fused loop is caught.
    layer_params = [init_layer_params(jax.random.fold_in(k_w, i))
                    for i in range(NUM_LAYERS)]

    # Tolerance 2e-4 leaves slack for the EUP approximate reciprocal in softmax.
    # ---- no-mask path (bias input compiled away) ----
    out = transformer_encoder_layers(src, layer_params, pos=pos)
    out = jax.block_until_ready(out)
    ref = reference_encoder(src, layer_params, bias=None, pos=pos)
    assert out.shape == (B, S, D_MODEL)
    assert jnp.allclose(out, ref, atol=2e-4, rtol=2e-4), "mismatch vs reference (no mask)"

    # ---- key-padding-mask path (no fully-padded row, per PyTorch NaN caveat) ----
    kpm = jnp.zeros((B, S), jnp.bool_).at[1, S - 2:].set(True)
    out_m = transformer_encoder_layers(src, layer_params, pos=pos,
                                       src_key_padding_mask=kpm)
    out_m = jax.block_until_ready(out_m)
    ref_m = reference_encoder(src, layer_params,
                              bias=build_attn_bias(None, kpm, B, S), pos=pos)
    assert jnp.allclose(out_m, ref_m, atol=2e-4, rtol=2e-4), "mismatch vs reference (mask)"

    print("KERNEL_OK")
</pallas_src>

<mosaic_0001>
module attributes {stable_mosaic.version = 11 : i64} {
  func.func @_encoder_kernel(%arg0: i32, %arg1: memref<1x8x32xf32, #tpu.memory_space<vmem>>, %arg2: memref<1x8x32xbf16, #tpu.memory_space<vmem>>, %arg3: memref<2x32x64xf32, #tpu.memory_space<vmem>>, %arg4: memref<2x1x64xf32, #tpu.memory_space<vmem>>, %arg5: memref<2x2x32x32xbf16, #tpu.memory_space<vmem>>, %arg6: memref<2x32x64xbf16, #tpu.memory_space<vmem>>, %arg7: memref<2x64x32xbf16, #tpu.memory_space<vmem>>, %arg8: memref<2x8x32xbf16, #tpu.memory_space<vmem>>, %arg9: memref<2x1x64xbf16, #tpu.memory_space<vmem>>, %arg10: memref<1x8x32xf32, #tpu.memory_space<vmem>>) attributes {dimension_semantics = [#tpu.dimension_semantics<parallel>], iteration_bounds = array<i64: 2>, scalar_prefetch = 0 : i64, scratch_operands = 0 : i64, tpu.core_type = #tpu.core_type<tc>, window_params = [{transform_indices = @transform_0, window_bounds = array<i64: 1, 8, 32>}, {transform_indices = @transform_1, window_bounds = array<i64: 1, 8, 32>}, {pipeline_mode = #tpu.pipeline_mode<synchronous>, transform_indices = @transform_2, window_bounds = array<i64: 2, 32, 64>}, {pipeline_mode = #tpu.pipeline_mode<synchronous>, transform_indices = @transform_3, window_bounds = array<i64: 2, 1, 64>}, {pipeline_mode = #tpu.pipeline_mode<synchronous>, transform_indices = @transform_4, window_bounds = array<i64: 2, 2, 32, 32>}, {pipeline_mode = #tpu.pipeline_mode<synchronous>, transform_indices = @transform_5, window_bounds = array<i64: 2, 32, 64>}, {pipeline_mode = #tpu.pipeline_mode<synchronous>, transform_indices = @transform_6, window_bounds = array<i64: 2, 64, 32>}, {pipeline_mode = #tpu.pipeline_mode<synchronous>, transform_indices = @transform_7, window_bounds = array<i64: 2, 8, 32>}, {pipeline_mode = #tpu.pipeline_mode<synchronous>, transform_indices = @transform_8, window_bounds = array<i64: 2, 1, 64>}, {transform_indices = @transform_9, window_bounds = array<i64: 1, 8, 32>}]} {
    %c0 = arith.constant 0 : index
    %c0_0 = arith.constant 0 : index
    %c0_1 = arith.constant 0 : index
    %0 = vector.load %arg1[%c0, %c0_0, %c0_1] : memref<1x8x32xf32, #tpu.memory_space<vmem>>, vector<1x8x32xf32>
    %1 = vector.shape_cast %0 : vector<1x8x32xf32> to vector<8x32xf32>
    %c0_2 = arith.constant 0 : index
    %c0_3 = arith.constant 0 : index
    %c0_4 = arith.constant 0 : index
    %2 = vector.load %arg2[%c0_2, %c0_3, %c0_4] : memref<1x8x32xbf16, #tpu.memory_space<vmem>>, vector<1x8x32xbf16>
    %3 = vector.shape_cast %2 : vector<1x8x32xbf16> to vector<8x32xbf16>
    %4 = arith.extf %3 : vector<8x32xbf16> to vector<8x32xf32>
    %c0_5 = arith.constant 0 : index
    %c0_6 = arith.constant 0 : index
    %c0_7 = arith.constant 0 : index
    %5 = vector.load %arg3[%c0_5, %c0_6, %c0_7] : memref<2x32x64xf32, #tpu.memory_space<vmem>>, vector<1x32x64xf32>
    %6 = vector.shape_cast %5 : vector<1x32x64xf32> to vector<32x64xf32>
    %c0_8 = arith.constant 0 : index
    %c0_9 = arith.constant 0 : index
    %c0_10 = arith.constant 0 : index
    %7 = vector.load %arg4[%c0_8, %c0_9, %c0_10] : memref<2x1x64xf32, #tpu.memory_space<vmem>>, vector<1x1x64xf32>
    %8 = vector.shape_cast %7 : vector<1x1x64xf32> to vector<1x64xf32>
    %c0_11 = arith.constant 0 : index
    %c0_12 = arith.constant 0 : index
    %c0_13 = arith.constant 0 : index
    %c0_14 = arith.constant 0 : index
    %9 = vector.load %arg5[%c0_11, %c0_12, %c0_13, %c0_14] : memref<2x2x32x32xbf16, #tpu.memory_space<vmem>>, vector<1x2x32x32xbf16>
    %10 = vector.shape_cast %9 : vector<1x2x32x32xbf16> to vector<2x32x32xbf16>
    %11 = arith.extf %10 : vector<2x32x32xbf16> to vector<2x32x32xf32>
    %c0_15 = arith.constant 0 : index
    %c0_16 = arith.constant 0 : index
    %c0_17 = arith.constant 0 : index
    %12 = vector.load %arg6[%c0_15, %c0_16, %c0_17] : memref<2x32x64xbf16, #tpu.memory_space<vmem>>, vector<1x32x64xbf16>
    %13 = vector.shape_cast %12 : vector<1x32x64xbf16> to vector<32x64xbf16>
    %14 = arith.extf %13 : vector<32x64xbf16> to vector<32x64xf32>
    %c0_18 = arith.constant 0 : index
    %c0_19 = arith.constant 0 : index
    %c0_20 = arith.constant 0 : index
    %15 = vector.load %arg7[%c0_18, %c0_19, %c0_20] : memref<2x64x32xbf16, #tpu.memory_space<vmem>>, vector<1x64x32xbf16>
    %16 = vector.shape_cast %15 : vector<1x64x32xbf16> to vector<64x32xbf16>
    %17 = arith.extf %16 : vector<64x32xbf16> to vector<64x32xf32>
    %c0_21 = arith.constant 0 : index
    %c0_22 = arith.constant 0 : index
    %c0_23 = arith.constant 0 : index
    %18 = vector.load %arg8[%c0_21, %c0_22, %c0_23] : memref<2x8x32xbf16, #tpu.memory_space<vmem>>, vector<1x8x32xbf16>
    %19 = vector.shape_cast %18 : vector<1x8x32xbf16> to vector<8x32xbf16>
    %20 = arith.extf %19 : vector<8x32xbf16> to vector<8x32xf32>
    %c0_24 = arith.constant 0 : index
    %c0_25 = arith.constant 0 : index
    %c0_26 = arith.constant 0 : index
    %21 = vector.load %arg9[%c0_24, %c0_25, %c0_26] : memref<2x1x64xbf16, #tpu.memory_space<vmem>>, vector<1x1x64xbf16>
    %22 = vector.shape_cast %21 : vector<1x1x64xbf16> to vector<1x64xbf16>
    %23 = arith.extf %22 : vector<1x64xbf16> to vector<1x64xf32>
    %24 = vector.extract_strided_slice %11 {offsets = [0, 0, 0], sizes = [1, 32, 32], strides = [1, 1, 1]} : vector<2x32x32xf32> to vector<1x32x32xf32>
    %25 = vector.shape_cast %24 : vector<1x32x32xf32> to vector<32x32xf32>
    %26 = vector.extract_strided_slice %11 {offsets = [1, 0, 0], sizes = [1, 32, 32], strides = [1, 1, 1]} : vector<2x32x32xf32> to vector<1x32x32xf32>
    %27 = vector.shape_cast %26 : vector<1x32x32xf32> to vector<32x32xf32>
    %28 = arith.addf %1, %4 : vector<8x32xf32>
    %cst = arith.constant dense<0.000000e+00> : vector<8x64xf32>
    %29 = tpu.matmul %28, %6, %cst {dimension_numbers = #tpu.dot_dimension_numbers<[1], [0], [0], [1], [0, 0, 1, 1], [], []>} : vector<8x32xf32>, vector<32x64xf32>, vector<8x64xf32> -> vector<8x64xf32>
    %30 = vector.broadcast %8 : vector<1x64xf32> to vector<8x64xf32>
    %31 = arith.addf %29, %30 : vector<8x64xf32>
    %cst_27 = arith.constant dense<0.000000e+00> : vector<8x32xf32>
    %32 = tpu.matmul %1, %25, %cst_27 {dimension_numbers = #tpu.dot_dimension_numbers<[1], [0], [0], [1], [0, 0, 1, 1], [], []>} : vector<8x32xf32>, vector<32x32xf32>, vector<8x32xf32> -> vector<8x32xf32>
    %33 = vector.extract_strided_slice %20 {offsets = [0, 0], sizes = [1, 32], strides = [1, 1]} : vector<8x32xf32> to vector<1x32xf32>
    %34 = vector.broadcast %33 : vector<1x32xf32> to vector<8x32xf32>
    %35 = arith.addf %32, %34 : vector<8x32xf32>
    %36 = vector.extract_strided_slice %31 {offsets = [0, 0], sizes = [8, 8], strides = [1, 1]} : vector<8x64xf32> to vector<8x8xf32>
    %37 = vector.extract_strided_slice %31 {offsets = [0, 32], sizes = [8, 8], strides = [1, 1]} : vector<8x64xf32> to vector<8x8xf32>
    %38 = vector.extract_strided_slice %35 {offsets = [0, 0], sizes = [8, 8], strides = [1, 1]} : vector<8x32xf32> to vector<8x8xf32>
    %cst_28 = arith.constant dense<0.000000e+00> : vector<8x8xf32>
    %39 = tpu.matmul %36, %37, %cst_28 {dimension_numbers = #tpu.dot_dimension_numbers<[1], [1], [0], [0], [0, 0, 1, 0], [], []>} : vector<8x8xf32>, vector<8x8xf32>, vector<8x8xf32> -> vector<8x8xf32>
    %cst_29 = arith.constant dense<0xFF800000> : vector<8xf32>
    %40 = vector.multi_reduction <maximumf>, %39, %cst_29 [1] : vector<8x8xf32> to vector<8xf32>
    %41 = vector.shape_cast %40 : vector<8xf32> to vector<8x1xf32>
    %42 = vector.broadcast %41 : vector<8x1xf32> to vector<8x8xf32>
    %43 = arith.subf %39, %42 : vector<8x8xf32>
    %44 = math.exp %43 : vector<8x8xf32>
    %cst_30 = arith.constant dense<0.000000e+00> : vector<8xf32>
    %45 = vector.multi_reduction <add>, %44, %cst_30 [1] : vector<8x8xf32> to vector<8xf32>
    %46 = vector.shape_cast %45 : vector<8xf32> to vector<8x1xf32>
    %47 = tpu.reciprocal %46 {approx = true} : vector<8x1xf32> -> vector<8x1xf32>
    %48 = vector.broadcast %47 : vector<8x1xf32> to vector<8x8xf32>
    %49 = arith.mulf %44, %48 : vector<8x8xf32>
    %cst_31 = arith.constant dense<0.000000e+00> : vector<8x8xf32>
    %50 = tpu.matmul %49, %38, %cst_31 {dimension_numbers = #tpu.dot_dimension_numbers<[1], [0], [0], [1], [0, 0, 1, 1], [], []>} : vector<8x8xf32>, vector<8x8xf32>, vector<8x8xf32> -> vector<8x8xf32>
    %51 = vector.extract_strided_slice %27 {offsets = [0, 0], sizes = [8, 32], strides = [1, 1]} : vector<32x32xf32> to vector<8x32xf32>
    %cst_32 = arith.constant dense<0.000000e+00> : vector<8x32xf32>
    %52 = tpu.matmul %50, %51, %cst_32 {dimension_numbers = #tpu.dot_dimension_numbers<[1], [0], [0], [1], [0, 0, 1, 1], [], []>} : vector<8x8xf32>, vector<8x32xf32>, vector<8x32xf32> -> vector<8x32xf32>
    %53 = vector.extract_strided_slice %31 {offsets = [0, 8], sizes = [8, 8], strides = [1, 1]} : vector<8x64xf32> to vector<8x8xf32>
    %54 = vector.extract_strided_slice %31 {offsets = [0, 40], sizes = [8, 8], strides = [1, 1]} : vector<8x64xf32> to vector<8x8xf32>
    %55 = vector.extract_strided_slice %35 {offsets = [0, 8], sizes = [8, 8], strides = [1, 1]} : vector<8x32xf32> to vector<8x8xf32>
    %cst_33 = arith.constant dense<0.000000e+00> : vector<8x8xf32>
    %56 = tpu.matmul %53, %54, %cst_33 {dimension_numbers = #tpu.dot_dimension_numbers<[1], [1], [0], [0], [0, 0, 1, 0], [], []>} : vector<8x8xf32>, vector<8x8xf32>, vector<8x8xf32> -> vector<8x8xf32>
    %cst_34 = arith.constant dense<0xFF800000> : vector<8xf32>
    %57 = vector.multi_reduction <maximumf>, %56, %cst_34 [1] : vector<8x8xf32> to vector<8xf32>
    %58 = vector.shape_cast %57 : vector<8xf32> to vector<8x1xf32>
    %59 = vector.broadcast %58 : vector<8x1xf32> to vector<8x8xf32>
    %60 = arith.subf %56, %59 : vector<8x8xf32>
    %61 = math.exp %60 : vector<8x8xf32>
    %cst_35 = arith.constant dense<0.000000e+00> : vector<8xf32>
    %62 = vector.multi_reduction <add>, %61, %cst_35 [1] : vector<8x8xf32> to vector<8xf32>
    %63 = vector.shape_cast %62 : vector<8xf32> to vector<8x1xf32>
    %64 = tpu.reciprocal %63 {approx = true} : vector<8x1xf32> -> vector<8x1xf32>
    %65 = vector.broadcast %64 : vector<8x1xf32> to vector<8x8xf32>
    %66 = arith.mulf %61, %65 : vector<8x8xf32>
    %cst_36 = arith.constant dense<0.000000e+00> : vector<8x8xf32>
    %67 = tpu.matmul %66, %55, %cst_36 {dimension_numbers = #tpu.dot_dimension_numbers<[1], [0], [0], [1], [0, 0, 1, 1], [], []>} : vector<8x8xf32>, vector<8x8xf32>, vector<8x8xf32> -> vector<8x8xf32>
    %68 = vector.extract_strided_slice %27 {offsets = [8, 0], sizes = [8, 32], strides = [1, 1]} : vector<32x32xf32> to vector<8x32xf32>
    %cst_37 = arith.constant dense<0.000000e+00> : vector<8x32xf32>
    %69 = tpu.matmul %67, %68, %cst_37 {dimension_numbers = #tpu.dot_dimension_numbers<[1], [0], [0], [1], [0, 0, 1, 1], [], []>} : vector<8x8xf32>, vector<8x32xf32>, vector<8x32xf32> -> vector<8x32xf32>
    %70 = arith.addf %52, %69 : vector<8x32xf32>
    %71 = vector.extract_strided_slice %31 {offsets = [0, 16], sizes = [8, 8], strides = [1, 1]} : vector<8x64xf32> to vector<8x8xf32>
    %72 = vector.extract_strided_slice %31 {offsets = [0, 48], sizes = [8, 8], strides = [1, 1]} : vector<8x64xf32> to vector<8x8xf32>
    %73 = vector.extract_strided_slice %35 {offsets = [0, 16], sizes = [8, 8], strides = [1, 1]} : vector<8x32xf32> to vector<8x8xf32>
    %cst_38 = arith.constant dense<0.000000e+00> : vector<8x8xf32>
    %74 = tpu.matmul %71, %72, %cst_38 {dimension_numbers = #tpu.dot_dimension_numbers<[1], [1], [0], [0], [0, 0, 1, 0], [], []>} : vector<8x8xf32>, vector<8x8xf32>, vector<8x8xf32> -> vector<8x8xf32>
    %cst_39 = arith.constant dense<0xFF800000> : vector<8xf32>
    %75 = vector.multi_reduction <maximumf>, %74, %cst_39 [1] : vector<8x8xf32> to vector<8xf32>
    %76 = vector.shape_cast %75 : vector<8xf32> to vector<8x1xf32>
    %77 = vector.broadcast %76 : vector<8x1xf32> to vector<8x8xf32>
    %78 = arith.subf %74, %77 : vector<8x8xf32>
    %79 = math.exp %78 : vector<8x8xf32>
    %cst_40 = arith.constant dense<0.000000e+00> : vector<8xf32>
    %80 = vector.multi_reduction <add>, %79, %cst_40 [1] : vector<8x8xf32> to vector<8xf32>
    %81 = vector.shape_cast %80 : vector<8xf32> to vector<8x1xf32>
    %82 = tpu.reciprocal %81 {approx = true} : vector<8x1xf32> -> vector<8x1xf32>
    %83 = vector.broadcast %82 : vector<8x1xf32> to vector<8x8xf32>
    %84 = arith.mulf %79, %83 : vector<8x8xf32>
    %cst_41 = arith.constant dense<0.000000e+00> : vector<8x8xf32>
    %85 = tpu.matmul %84, %73, %cst_41 {dimension_numbers = #tpu.dot_dimension_numbers<[1], [0], [0], [1], [0, 0, 1, 1], [], []>} : vector<8x8xf32>, vector<8x8xf32>, vector<8x8xf32> -> vector<8x8xf32>
    %86 = vector.extract_strided_slice %27 {offsets = [16, 0], sizes = [8, 32], strides = [1, 1]} : vector<32x32xf32> to vector<8x32xf32>
    %cst_42 = arith.constant dense<0.000000e+00> : vector<8x32xf32>
    %87 = tpu.matmul %85, %86, %cst_42 {dimension_numbers = #tpu.dot_dimension_numbers<[1], [0], [0], [1], [0, 0, 1, 1], [], []>} : vector<8x8xf32>, vector<8x32xf32>, vector<8x32xf32> -> vector<8x32xf32>
    %88 = arith.addf %70, %87 : vector<8x32xf32>
    %89 = vector.extract_strided_slice %31 {offsets = [0, 24], sizes = [8, 8], strides = [1, 1]} : vector<8x64xf32> to vector<8x8xf32>
    %90 = vector.extract_strided_slice %31 {offsets = [0, 56], sizes = [8, 8], strides = [1, 1]} : vector<8x64xf32> to vector<8x8xf32>
    %91 = vector.extract_strided_slice %35 {offsets = [0, 24], sizes = [8, 8], strides = [1, 1]} : vector<8x32xf32> to vector<8x8xf32>
    %cst_43 = arith.constant dense<0.000000e+00> : vector<8x8xf32>
    %92 = tpu.matmul %89, %90, %cst_43 {dimension_numbers = #tpu.dot_dimension_numbers<[1], [1], [0], [0], [0, 0, 1, 0], [], []>} : vector<8x8xf32>, vector<8x8xf32>, vector<8x8xf32> -> vector<8x8xf32>
    %cst_44 = arith.constant dense<0xFF800000> : vector<8xf32>
    %93 = vector.multi_reduction <maximumf>, %92, %cst_44 [1] : vector<8x8xf32> to vector<8xf32>
    %94 = vector.shape_cast %93 : vector<8xf32> to vector<8x1xf32>
    %95 = vector.broadcast %94 : vector<8x1xf32> to vector<8x8xf32>
    %96 = arith.subf %92, %95 : vector<8x8xf32>
    %97 = math.exp %96 : vector<8x8xf32>
    %cst_45 = arith.constant dense<0.000000e+00> : vector<8xf32>
    %98 = vector.multi_reduction <add>, %97, %cst_45 [1] : vector<8x8xf32> to vector<8xf32>
    %99 = vector.shape_cast %98 : vector<8xf32> to vector<8x1xf32>
    %100 = tpu.reciprocal %99 {approx = true} : vector<8x1xf32> -> vector<8x1xf32>
    %101 = vector.broadcast %100 : vector<8x1xf32> to vector<8x8xf32>
    %102 = arith.mulf %97, %101 : vector<8x8xf32>
    %cst_46 = arith.constant dense<0.000000e+00> : vector<8x8xf32>
    %103 = tpu.matmul %102, %91, %cst_46 {dimension_numbers = #tpu.dot_dimension_numbers<[1], [0], [0], [1], [0, 0, 1, 1], [], []>} : vector<8x8xf32>, vector<8x8xf32>, vector<8x8xf32> -> vector<8x8xf32>
    %104 = vector.extract_strided_slice %27 {offsets = [24, 0], sizes = [8, 32], strides = [1, 1]} : vector<32x32xf32> to vector<8x32xf32>
    %cst_47 = arith.constant dense<0.000000e+00> : vector<8x32xf32>
    %105 = tpu.matmul %103, %104, %cst_47 {dimension_numbers = #tpu.dot_dimension_numbers<[1], [0], [0], [1], [0, 0, 1, 1], [], []>} : vector<8x8xf32>, vector<8x32xf32>, vector<8x32xf32> -> vector<8x32xf32>
    %106 = arith.addf %88, %105 : vector<8x32xf32>
    %107 = vector.extract_strided_slice %20 {offsets = [1, 0], sizes = [1, 32], strides = [1, 1]} : vector<8x32xf32> to vector<1x32xf32>
    %108 = vector.broadcast %107 : vector<1x32xf32> to vector<8x32xf32>
    %109 = arith.addf %106, %108 : vector<8x32xf32>
    %110 = arith.addf %1, %109 : vector<8x32xf32>
    %111 = vector.extract_strided_slice %20 {offsets = [2, 0], sizes = [1, 32], strides = [1, 1]} : vector<8x32xf32> to vector<1x32xf32>
    %112 = vector.extract_strided_slice %20 {offsets = [3, 0], sizes = [1, 32], strides = [1, 1]} : vector<8x32xf32> to vector<1x32xf32>
    %cst_48 = arith.constant dense<0.000000e+00> : vector<8xf32>
    %113 = vector.multi_reduction <add>, %110, %cst_48 [1] : vector<8x32xf32> to vector<8xf32>
    %114 = vector.shape_cast %113 : vector<8xf32> to vector<8x1xf32>
    %cst_49 = arith.constant 3.200000e+01 : f32
    %115 = vector.broadcast %cst_49 : f32 to vector<8x1xf32>
    %116 = arith.divf %114, %115 : vector<8x1xf32>
    %117 = vector.broadcast %116 : vector<8x1xf32> to vector<8x32xf32>
    %118 = arith.subf %110, %117 : vector<8x32xf32>
    %119 = arith.mulf %118, %118 : vector<8x32xf32>
    %cst_50 = arith.constant dense<0.000000e+00> : vector<8xf32>
    %120 = vector.multi_reduction <add>, %119, %cst_50 [1] : vector<8x32xf32> to vector<8xf32>
    %121 = vector.shape_cast %120 : vector<8xf32> to vector<8x1xf32>
    %cst_51 = arith.constant 3.200000e+01 : f32
    %122 = vector.broadcast %cst_51 : f32 to vector<8x1xf32>
    %123 = arith.divf %121, %122 : vector<8x1xf32>
    %124 = vector.broadcast %116 : vector<8x1xf32> to vector<8x32xf32>
    %125 = arith.subf %110, %124 : vector<8x32xf32>
    %cst_52 = arith.constant 9.99999974E-6 : f32
    %126 = vector.broadcast %cst_52 : f32 to vector<8x1xf32>
    %127 = arith.addf %123, %126 : vector<8x1xf32>
    %128 = math.rsqrt %127 : vector<8x1xf32>
    %129 = vector.broadcast %128 : vector<8x1xf32> to vector<8x32xf32>
    %130 = arith.mulf %125, %129 : vector<8x32xf32>
    %131 = vector.broadcast %111 : vector<1x32xf32> to vector<8x32xf32>
    %132 = arith.mulf %130, %131 : vector<8x32xf32>
    %133 = vector.broadcast %112 : vector<1x32xf32> to vector<8x32xf32>
    %134 = arith.addf %132, %133 : vector<8x32xf32>
    %cst_53 = arith.constant dense<0.000000e+00> : vector<8x64xf32>
    %135 = tpu.matmul %134, %14, %cst_53 {dimension_numbers = #tpu.dot_dimension_numbers<[1], [0], [0], [1], [0, 0, 1, 1], [], []>} : vector<8x32xf32>, vector<32x64xf32>, vector<8x64xf32> -> vector<8x64xf32>
    %136 = vector.broadcast %23 : vector<1x64xf32> to vector<8x64xf32>
    %137 = arith.addf %135, %136 : vector<8x64xf32>
    %cst_54 = arith.constant 0.000000e+00 : f32
    %138 = vector.broadcast %cst_54 : f32 to vector<8x64xf32>
    %139 = arith.maximumf %137, %138 : vector<8x64xf32>
    %cst_55 = arith.constant dense<0.000000e+00> : vector<8x32xf32>
    %140 = tpu.matmul %139, %17, %cst_55 {dimension_numbers = #tpu.dot_dimension_numbers<[1], [0], [0], [1], [0, 0, 1, 1], [], []>} : vector<8x64xf32>, vector<64x32xf32>, vector<8x32xf32> -> vector<8x32xf32>
    %141 = vector.extract_strided_slice %20 {offsets = [6, 0], sizes = [1, 32], strides = [1, 1]} : vector<8x32xf32> to vector<1x32xf32>
    %142 = vector.broadcast %141 : vector<1x32xf32> to vector<8x32xf32>
    %143 = arith.addf %140, %142 : vector<8x32xf32>
    %144 = arith.addf %134, %143 : vector<8x32xf32>
    %145 = vector.extract_strided_slice %20 {offsets = [4, 0], sizes = [1, 32], strides = [1, 1]} : vector<8x32xf32> to vector<1x32xf32>
    %146 = vector.extract_strided_slice %20 {offsets = [5, 0], sizes = [1, 32], strides = [1, 1]} : vector<8x32xf32> to vector<1x32xf32>
    %cst_56 = arith.constant dense<0.000000e+00> : vector<8xf32>
    %147 = vector.multi_reduction <add>, %144, %cst_56 [1] : vector<8x32xf32> to vector<8xf32>
    %148 = vector.shape_cast %147 : vector<8xf32> to vector<8x1xf32>
    %cst_57 = arith.constant 3.200000e+01 : f32
    %149 = vector.broadcast %cst_57 : f32 to vector<8x1xf32>
    %150 = arith.divf %148, %149 : vector<8x1xf32>
    %151 = vector.broadcast %150 : vector<8x1xf32> to vector<8x32xf32>
    %152 = arith.subf %144, %151 : vector<8x32xf32>
    %153 = arith.mulf %152, %152 : vector<8x32xf32>
    %cst_58 = arith.constant dense<0.000000e+00> : vector<8xf32>
    %154 = vector.multi_reduction <add>, %153, %cst_58 [1] : vector<8x32xf32> to vector<8xf32>
    %155 = vector.shape_cast %154 : vector<8xf32> to vector<8x1xf32>
    %cst_59 = arith.constant 3.200000e+01 : f32
    %156 = vector.broadcast %cst_59 : f32 to vector<8x1xf32>
    %157 = arith.divf %155, %156 : vector<8x1xf32>
    %158 = vector.broadcast %150 : vector<8x1xf32> to vector<8x32xf32>
    %159 = arith.subf %144, %158 : vector<8x32xf32>
    %cst_60 = arith.constant 9.99999974E-6 : f32
    %160 = vector.broadcast %cst_60 : f32 to vector<8x1xf32>
    %161 = arith.addf %157, %160 : vector<8x1xf32>
    %162 = math.rsqrt %161 : vector<8x1xf32>
    %163 = vector.broadcast %162 : vector<8x1xf32> to vector<8x32xf32>
    %164 = arith.mulf %159, %163 : vector<8x32xf32>
    %165 = vector.broadcast %145 : vector<1x32xf32> to vector<8x32xf32>
    %166 = arith.mulf %164, %165 : vector<8x32xf32>
    %167 = vector.broadcast %146 : vector<1x32xf32> to vector<8x32xf32>
    %168 = arith.addf %166, %167 : vector<8x32xf32>
    %c1 = arith.constant 1 : index
    %c0_61 = arith.constant 0 : index
    %c0_62 = arith.constant 0 : index
    %169 = vector.load %arg3[%c1, %c0_61, %c0_62] : memref<2x32x64xf32, #tpu.memory_space<vmem>>, vector<1x32x64xf32>
    %170 = vector.shape_cast %169 : vector<1x32x64xf32> to vector<32x64xf32>
    %c1_63 = arith.constant 1 : index
    %c0_64 = arith.constant 0 : index
    %c0_65 = arith.constant 0 : index
    %171 = vector.load %arg4[%c1_63, %c0_64, %c0_65] : memref<2x1x64xf32, #tpu.memory_space<vmem>>, vector<1x1x64xf32>
    %172 = vector.shape_cast %171 : vector<1x1x64xf32> to vector<1x64xf32>
    %c1_66 = arith.constant 1 : index
    %c0_67 = arith.constant 0 : index
    %c0_68 = arith.constant 0 : index
    %c0_69 = arith.constant 0 : index
    %173 = vector.load %arg5[%c1_66, %c0_67, %c0_68, %c0_69] : memref<2x2x32x32xbf16, #tpu.memory_space<vmem>>, vector<1x2x32x32xbf16>
    %174 = vector.shape_cast %173 : vector<1x2x32x32xbf16> to vector<2x32x32xbf16>
    %175 = arith.extf %174 : vector<2x32x32xbf16> to vector<2x32x32xf32>
    %c1_70 = arith.constant 1 : index
    %c0_71 = arith.constant 0 : index
    %c0_72 = arith.constant 0 : index
    %176 = vector.load %arg6[%c1_70, %c0_71, %c0_72] : memref<2x32x64xbf16, #tpu.memory_space<vmem>>, vector<1x32x64xbf16>
    %177 = vector.shape_cast %176 : vector<1x32x64xbf16> to vector<32x64xbf16>
    %178 = arith.extf %177 : vector<32x64xbf16> to vector<32x64xf32>
    %c1_73 = arith.constant 1 : index
    %c0_74 = arith.constant 0 : index
    %c0_75 = arith.constant 0 : index
    %179 = vector.load %arg7[%c1_73, %c0_74, %c0_75] : memref<2x64x32xbf16, #tpu.memory_space<vmem>>, vector<1x64x32xbf16>
    %180 = vector.shape_cast %179 : vector<1x64x32xbf16> to vector<64x32xbf16>
    %181 = arith.extf %180 : vector<64x32xbf16> to vector<64x32xf32>
    %c1_76 = arith.constant 1 : index
    %c0_77 = arith.constant 0 : index
    %c0_78 = arith.constant 0 : index
    %182 = vector.load %arg8[%c1_76, %c0_77, %c0_78] : memref<2x8x32xbf16, #tpu.memory_space<vmem>>, vector<1x8x32xbf16>
    %183 = vector.shape_cast %182 : vector<1x8x32xbf16> to vector<8x32xbf16>
    %184 = arith.extf %183 : vector<8x32xbf16> to vector<8x32xf32>
    %c1_79 = arith.constant 1 : index
    %c0_80 = arith.constant 0 : index
    %c0_81 = arith.constant 0 : index
    %185 = vector.load %arg9[%c1_79, %c0_80, %c0_81] : memref<2x1x64xbf16, #tpu.memory_space<vmem>>, vector<1x1x64xbf16>
    %186 = vector.shape_cast %185 : vector<1x1x64xbf16> to vector<1x64xbf16>
    %187 = arith.extf %186 : vector<1x64xbf16> to vector<1x64xf32>
    %188 = vector.extract_strided_slice %175 {offsets = [0, 0, 0], sizes = [1, 32, 32], strides = [1, 1, 1]} : vector<2x32x32xf32> to vector<1x32x32xf32>
    %189 = vector.shape_cast %188 : vector<1x32x32xf32> to vector<32x32xf32>
    %190 = vector.extract_strided_slice %175 {offsets = [1, 0, 0], sizes = [1, 32, 32], strides = [1, 1, 1]} : vector<2x32x32xf32> to vector<1x32x32xf32>
    %191 = vector.shape_cast %190 : vector<1x32x32xf32> to vector<32x32xf32>
    %192 = arith.addf %168, %4 : vector<8x32xf32>
    %cst_82 = arith.constant dense<0.000000e+00> : vector<8x64xf32>
    %193 = tpu.matmul %192, %170, %cst_82 {dimension_numbers = #tpu.dot_dimension_numbers<[1], [0], [0], [1], [0, 0, 1, 1], [], []>} : vector<8x32xf32>, vector<32x64xf32>, vector<8x64xf32> -> vector<8x64xf32>
    %194 = vector.broadcast %172 : vector<1x64xf32> to vector<8x64xf32>
    %195 = arith.addf %193, %194 : vector<8x64xf32>
    %cst_83 = arith.constant dense<0.000000e+00> : vector<8x32xf32>
    %196 = tpu.matmul %168, %189, %cst_83 {dimension_numbers = #tpu.dot_dimension_numbers<[1], [0], [0], [1], [0, 0, 1, 1], [], []>} : vector<8x32xf32>, vector<32x32xf32>, vector<8x32xf32> -> vector<8x32xf32>
    %197 = vector.extract_strided_slice %184 {offsets = [0, 0], sizes = [1, 32], strides = [1, 1]} : vector<8x32xf32> to vector<1x32xf32>
    %198 = vector.broadcast %197 : vector<1x32xf32> to vector<8x32xf32>
    %199 = arith.addf %196, %198 : vector<8x32xf32>
    %200 = vector.extract_strided_slice %195 {offsets = [0, 0], sizes = [8, 8], strides = [1, 1]} : vector<8x64xf32> to vector<8x8xf32>
    %201 = vector.extract_strided_slice %195 {offsets = [0, 32], sizes = [8, 8], strides = [1, 1]} : vector<8x64xf32> to vector<8x8xf32>
    %202 = vector.extract_strided_slice %199 {offsets = [0, 0], sizes = [8, 8], strides = [1, 1]} : vector<8x32xf32> to vector<8x8xf32>
    %cst_84 = arith.constant dense<0.000000e+00> : vector<8x8xf32>
    %203 = tpu.matmul %200, %201, %cst_84 {dimension_numbers = #tpu.dot_dimension_numbers<[1], [1], [0], [0], [0, 0, 1, 0], [], []>} : vector<8x8xf32>, vector<8x8xf32>, vector<8x8xf32> -> vector<8x8xf32>
    %cst_85 = arith.constant dense<0xFF800000> : vector<8xf32>
    %204 = vector.multi_reduction <maximumf>, %203, %cst_85 [1] : vector<8x8xf32> to vector<8xf32>
    %205 = vector.shape_cast %204 : vector<8xf32> to vector<8x1xf32>
    %206 = vector.broadcast %205 : vector<8x1xf32> to vector<8x8xf32>
    %207 = arith.subf %203, %206 : vector<8x8xf32>
    %208 = math.exp %207 : vector<8x8xf32>
    %cst_86 = arith.constant dense<0.000000e+00> : vector<8xf32>
    %209 = vector.multi_reduction <add>, %208, %cst_86 [1] : vector<8x8xf32> to vector<8xf32>
    %210 = vector.shape_cast %209 : vector<8xf32> to vector<8x1xf32>
    %211 = tpu.reciprocal %210 {approx = true} : vector<8x1xf32> -> vector<8x1xf32>
    %212 = vector.broadcast %211 : vector<8x1xf32> to vector<8x8xf32>
    %213 = arith.mulf %208, %212 : vector<8x8xf32>
    %cst_87 = arith.constant dense<0.000000e+00> : vector<8x8xf32>
    %214 = tpu.matmul %213, %202, %cst_87 {dimension_numbers = #tpu.dot_dimension_numbers<[1], [0], [0], [1], [0, 0, 1, 1], [], []>} : vector<8x8xf32>, vector<8x8xf32>, vector<8x8xf32> -> vector<8x8xf32>
    %215 = vector.extract_strided_slice %191 {offsets = [0, 0], sizes = [8, 32], strides = [1, 1]} : vector<32x32xf32> to vector<8x32xf32>
    %cst_88 = arith.constant dense<0.000000e+00> : vector<8x32xf32>
    %216 = tpu.matmul %214, %215, %cst_88 {dimension_numbers = #tpu.dot_dimension_numbers<[1], [0], [0], [1], [0, 0, 1, 1], [], []>} : vector<8x8xf32>, vector<8x32xf32>, vector<8x32xf32> -> vector<8x32xf32>
    %217 = vector.extract_strided_slice %195 {offsets = [0, 8], sizes = [8, 8], strides = [1, 1]} : vector<8x64xf32> to vector<8x8xf32>
    %218 = vector.extract_strided_slice %195 {offsets = [0, 40], sizes = [8, 8], strides = [1, 1]} : vector<8x64xf32> to vector<8x8xf32>
    %219 = vector.extract_strided_slice %199 {offsets = [0, 8], sizes = [8, 8], strides = [1, 1]} : vector<8x32xf32> to vector<8x8xf32>
    %cst_89 = arith.constant dense<0.000000e+00> : vector<8x8xf32>
    %220 = tpu.matmul %217, %218, %cst_89 {dimension_numbers = #tpu.dot_dimension_numbers<[1], [1], [0], [0], [0, 0, 1, 0], [], []>} : vector<8x8xf32>, vector<8x8xf32>, vector<8x8xf32> -> vector<8x8xf32>
    %cst_90 = arith.constant dense<0xFF800000> : vector<8xf32>
    %221 = vector.multi_reduction <maximumf>, %220, %cst_90 [1] : vector<8x8xf32> to vector<8xf32>
    %222 = vector.shape_cast %221 : vector<8xf32> to vector<8x1xf32>
    %223 = vector.broadcast %222 : vector<8x1xf32> to vector<8x8xf32>
    %224 = arith.subf %220, %223 : vector<8x8xf32>
    %225 = math.exp %224 : vector<8x8xf32>
    %cst_91 = arith.constant dense<0.000000e+00> : vector<8xf32>
    %226 = vector.multi_reduction <add>, %225, %cst_91 [1] : vector<8x8xf32> to vector<8xf32>
    %227 = vector.shape_cast %226 : vector<8xf32> to vector<8x1xf32>
    %228 = tpu.reciprocal %227 {approx = true} : vector<8x1xf32> -> vector<8x1xf32>
    %229 = vector.broadcast %228 : vector<8x1xf32> to vector<8x8xf32>
    %230 = arith.mulf %225, %229 : vector<8x8xf32>
    %cst_92 = arith.constant dense<0.000000e+00> : vector<8x8xf32>
    %231 = tpu.matmul %230, %219, %cst_92 {dimension_numbers = #tpu.dot_dimension_numbers<[1], [0], [0], [1], [0, 0, 1, 1], [], []>} : vector<8x8xf32>, vector<8x8xf32>, vector<8x8xf32> -> vector<8x8xf32>
    %232 = vector.extract_strided_slice %191 {offsets = [8, 0], sizes = [8, 32], strides = [1, 1]} : vector<32x32xf32> to vector<8x32xf32>
    %cst_93 = arith.constant dense<0.000000e+00> : vector<8x32xf32>
    %233 = tpu.matmul %231, %232, %cst_93 {dimension_numbers = #tpu.dot_dimension_numbers<[1], [0], [0], [1], [0, 0, 1, 1], [], []>} : vector<8x8xf32>, vector<8x32xf32>, vector<8x32xf32> -> vector<8x32xf32>
    %234 = arith.addf %216, %233 : vector<8x32xf32>
    %235 = vector.extract_strided_slice %195 {offsets = [0, 16], sizes = [8, 8], strides = [1, 1]} : vector<8x64xf32> to vector<8x8xf32>
    %236 = vector.extract_strided_slice %195 {offsets = [0, 48], sizes = [8, 8], strides = [1, 1]} : vector<8x64xf32> to vector<8x8xf32>
    %237 = vector.extract_strided_slice %199 {offsets = [0, 16], sizes = [8, 8], strides = [1, 1]} : vector<8x32xf32> to vector<8x8xf32>
    %cst_94 = arith.constant dense<0.000000e+00> : vector<8x8xf32>
    %238 = tpu.matmul %235, %236, %cst_94 {dimension_numbers = #tpu.dot_dimension_numbers<[1], [1], [0], [0], [0, 0, 1, 0], [], []>} : vector<8x8xf32>, vector<8x8xf32>, vector<8x8xf32> -> vector<8x8xf32>
    %cst_95 = arith.constant dense<0xFF800000> : vector<8xf32>
    %239 = vector.multi_reduction <maximumf>, %238, %cst_95 [1] : vector<8x8xf32> to vector<8xf32>
    %240 = vector.shape_cast %239 : vector<8xf32> to vector<8x1xf32>
    %241 = vector.broadcast %240 : vector<8x1xf32> to vector<8x8xf32>
    %242 = arith.subf %238, %241 : vector<8x8xf32>
    %243 = math.exp %242 : vector<8x8xf32>
    %cst_96 = arith.constant dense<0.000000e+00> : vector<8xf32>
    %244 = vector.multi_reduction <add>, %243, %cst_96 [1] : vector<8x8xf32> to vector<8xf32>
    %245 = vector.shape_cast %244 : vector<8xf32> to vector<8x1xf32>
    %246 = tpu.reciprocal %245 {approx = true} : vector<8x1xf32> -> vector<8x1xf32>
    %247 = vector.broadcast %246 : vector<8x1xf32> to vector<8x8xf32>
    %248 = arith.mulf %243, %247 : vector<8x8xf32>
    %cst_97 = arith.constant dense<0.000000e+00> : vector<8x8xf32>
    %249 = tpu.matmul %248, %237, %cst_97 {dimension_numbers = #tpu.dot_dimension_numbers<[1], [0], [0], [1], [0, 0, 1, 1], [], []>} : vector<8x8xf32>, vector<8x8xf32>, vector<8x8xf32> -> vector<8x8xf32>
    %250 = vector.extract_strided_slice %191 {offsets = [16, 0], sizes = [8, 32], strides = [1, 1]} : vector<32x32xf32> to vector<8x32xf32>
    %cst_98 = arith.constant dense<0.000000e+00> : vector<8x32xf32>
    %251 = tpu.matmul %249, %250, %cst_98 {dimension_numbers = #tpu.dot_dimension_numbers<[1], [0], [0], [1], [0, 0, 1, 1], [], []>} : vector<8x8xf32>, vector<8x32xf32>, vector<8x32xf32> -> vector<8x32xf32>
    %252 = arith.addf %234, %251 : vector<8x32xf32>
    %253 = vector.extract_strided_slice %195 {offsets = [0, 24], sizes = [8, 8], strides = [1, 1]} : vector<8x64xf32> to vector<8x8xf32>
    %254 = vector.extract_strided_slice %195 {offsets = [0, 56], sizes = [8, 8], strides = [1, 1]} : vector<8x64xf32> to vector<8x8xf32>
    %255 = vector.extract_strided_slice %199 {offsets = [0, 24], sizes = [8, 8], strides = [1, 1]} : vector<8x32xf32> to vector<8x8xf32>
    %cst_99 = arith.constant dense<0.000000e+00> : vector<8x8xf32>
    %256 = tpu.matmul %253, %254, %cst_99 {dimension_numbers = #tpu.dot_dimension_numbers<[1], [1], [0], [0], [0, 0, 1, 0], [], []>} : vector<8x8xf32>, vector<8x8xf32>, vector<8x8xf32> -> vector<8x8xf32>
    %cst_100 = arith.constant dense<0xFF800000> : vector<8xf32>
    %257 = vector.multi_reduction <maximumf>, %256, %cst_100 [1] : vector<8x8xf32> to vector<8xf32>
    %258 = vector.shape_cast %257 : vector<8xf32> to vector<8x1xf32>
    %259 = vector.broadcast %258 : vector<8x1xf32> to vector<8x8xf32>
    %260 = arith.subf %256, %259 : vector<8x8xf32>
    %261 = math.exp %260 : vector<8x8xf32>
    %cst_101 = arith.constant dense<0.000000e+00> : vector<8xf32>
    %262 = vector.multi_reduction <add>, %261, %cst_101 [1] : vector<8x8xf32> to vector<8xf32>
    %263 = vector.shape_cast %262 : vector<8xf32> to vector<8x1xf32>
    %264 = tpu.reciprocal %263 {approx = true} : vector<8x1xf32> -> vector<8x1xf32>
    %265 = vector.broadcast %264 : vector<8x1xf32> to vector<8x8xf32>
    %266 = arith.mulf %261, %265 : vector<8x8xf32>
    %cst_102 = arith.constant dense<0.000000e+00> : vector<8x8xf32>
    %267 = tpu.matmul %266, %255, %cst_102 {dimension_numbers = #tpu.dot_dimension_numbers<[1], [0], [0], [1], [0, 0, 1, 1], [], []>} : vector<8x8xf32>, vector<8x8xf32>, vector<8x8xf32> -> vector<8x8xf32>
    %268 = vector.extract_strided_slice %191 {offsets = [24, 0], sizes = [8, 32], strides = [1, 1]} : vector<32x32xf32> to vector<8x32xf32>
    %cst_103 = arith.constant dense<0.000000e+00> : vector<8x32xf32>
    %269 = tpu.matmul %267, %268, %cst_103 {dimension_numbers = #tpu.dot_dimension_numbers<[1], [0], [0], [1], [0, 0, 1, 1], [], []>} : vector<8x8xf32>, vector<8x32xf32>, vector<8x32xf32> -> vector<8x32xf32>
    %270 = arith.addf %252, %269 : vector<8x32xf32>
    %271 = vector.extract_strided_slice %184 {offsets = [1, 0], sizes = [1, 32], strides = [1, 1]} : vector<8x32xf32> to vector<1x32xf32>
    %272 = vector.broadcast %271 : vector<1x32xf32> to vector<8x32xf32>
    %273 = arith.addf %270, %272 : vector<8x32xf32>
    %274 = arith.addf %168, %273 : vector<8x32xf32>
    %275 = vector.extract_strided_slice %184 {offsets = [2, 0], sizes = [1, 32], strides = [1, 1]} : vector<8x32xf32> to vector<1x32xf32>
    %276 = vector.extract_strided_slice %184 {offsets = [3, 0], sizes = [1, 32], strides = [1, 1]} : vector<8x32xf32> to vector<1x32xf32>
    %cst_104 = arith.constant dense<0.000000e+00> : vector<8xf32>
    %277 = vector.multi_reduction <add>, %274, %cst_104 [1] : vector<8x32xf32> to vector<8xf32>
    %278 = vector.shape_cast %277 : vector<8xf32> to vector<8x1xf32>
    %cst_105 = arith.constant 3.200000e+01 : f32
    %279 = vector.broadcast %cst_105 : f32 to vector<8x1xf32>
    %280 = arith.divf %278, %279 : vector<8x1xf32>
    %281 = vector.broadcast %280 : vector<8x1xf32> to vector<8x32xf32>
    %282 = arith.subf %274, %281 : vector<8x32xf32>
    %283 = arith.mulf %282, %282 : vector<8x32xf32>
    %cst_106 = arith.constant dense<0.000000e+00> : vector<8xf32>
    %284 = vector.multi_reduction <add>, %283, %cst_106 [1] : vector<8x32xf32> to vector<8xf32>
    %285 = vector.shape_cast %284 : vector<8xf32> to vector<8x1xf32>
    %cst_107 = arith.constant 3.200000e+01 : f32
    %286 = vector.broadcast %cst_107 : f32 to vector<8x1xf32>
    %287 = arith.divf %285, %286 : vector<8x1xf32>
    %288 = vector.broadcast %280 : vector<8x1xf32> to vector<8x32xf32>
    %289 = arith.subf %274, %288 : vector<8x32xf32>
    %cst_108 = arith.constant 9.99999974E-6 : f32
    %290 = vector.broadcast %cst_108 : f32 to vector<8x1xf32>
    %291 = arith.addf %287, %290 : vector<8x1xf32>
    %292 = math.rsqrt %291 : vector<8x1xf32>
    %293 = vector.broadcast %292 : vector<8x1xf32> to vector<8x32xf32>
    %294 = arith.mulf %289, %293 : vector<8x32xf32>
    %295 = vector.broadcast %275 : vector<1x32xf32> to vector<8x32xf32>
    %296 = arith.mulf %294, %295 : vector<8x32xf32>
    %297 = vector.broadcast %276 : vector<1x32xf32> to vector<8x32xf32>
    %298 = arith.addf %296, %297 : vector<8x32xf32>
    %cst_109 = arith.constant dense<0.000000e+00> : vector<8x64xf32>
    %299 = tpu.matmul %298, %178, %cst_109 {dimension_numbers = #tpu.dot_dimension_numbers<[1], [0], [0], [1], [0, 0, 1, 1], [], []>} : vector<8x32xf32>, vector<32x64xf32>, vector<8x64xf32> -> vector<8x64xf32>
    %300 = vector.broadcast %187 : vector<1x64xf32> to vector<8x64xf32>
    %301 = arith.addf %299, %300 : vector<8x64xf32>
    %cst_110 = arith.constant 0.000000e+00 : f32
    %302 = vector.broadcast %cst_110 : f32 to vector<8x64xf32>
    %303 = arith.maximumf %301, %302 : vector<8x64xf32>
    %cst_111 = arith.constant dense<0.000000e+00> : vector<8x32xf32>
    %304 = tpu.matmul %303, %181, %cst_111 {dimension_numbers = #tpu.dot_dimension_numbers<[1], [0], [0], [1], [0, 0, 1, 1], [], []>} : vector<8x64xf32>, vector<64x32xf32>, vector<8x32xf32> -> vector<8x32xf32>
    %305 = vector.extract_strided_slice %184 {offsets = [6, 0], sizes = [1, 32], strides = [1, 1]} : vector<8x32xf32> to vector<1x32xf32>
    %306 = vector.broadcast %305 : vector<1x32xf32> to vector<8x32xf32>
    %307 = arith.addf %304, %306 : vector<8x32xf32>
    %308 = arith.addf %298, %307 : vector<8x32xf32>
    %309 = vector.extract_strided_slice %184 {offsets = [4, 0], sizes = [1, 32], strides = [1, 1]} : vector<8x32xf32> to vector<1x32xf32>
    %310 = vector.extract_strided_slice %184 {offsets = [5, 0], sizes = [1, 32], strides = [1, 1]} : vector<8x32xf32> to vector<1x32xf32>
    %cst_112 = arith.constant dense<0.000000e+00> : vector<8xf32>
    %311 = vector.multi_reduction <add>, %308, %cst_112 [1] : vector<8x32xf32> to vector<8xf32>
    %312 = vector.shape_cast %311 : vector<8xf32> to vector<8x1xf32>
    %cst_113 = arith.constant 3.200000e+01 : f32
    %313 = vector.broadcast %cst_113 : f32 to vector<8x1xf32>
    %314 = arith.divf %312, %313 : vector<8x1xf32>
    %315 = vector.broadcast %314 : vector<8x1xf32> to vector<8x32xf32>
    %316 = arith.subf %308, %315 : vector<8x32xf32>
    %317 = arith.mulf %316, %316 : vector<8x32xf32>
    %cst_114 = arith.constant dense<0.000000e+00> : vector<8xf32>
    %318 = vector.multi_reduction <add>, %317, %cst_114 [1] : vector<8x32xf32> to vector<8xf32>
    %319 = vector.shape_cast %318 : vector<8xf32> to vector<8x1xf32>
    %cst_115 = arith.constant 3.200000e+01 : f32
    %320 = vector.broadcast %cst_115 : f32 to vector<8x1xf32>
    %321 = arith.divf %319, %320 : vector<8x1xf32>
    %322 = vector.broadcast %314 : vector<8x1xf32> to vector<8x32xf32>
    %323 = arith.subf %308, %322 : vector<8x32xf32>
    %cst_116 = arith.constant 9.99999974E-6 : f32
    %324 = vector.broadcast %cst_116 : f32 to vector<8x1xf32>
    %325 = arith.addf %321, %324 : vector<8x1xf32>
    %326 = math.rsqrt %325 : vector<8x1xf32>
    %327 = vector.broadcast %326 : vector<8x1xf32> to vector<8x32xf32>
    %328 = arith.mulf %323, %327 : vector<8x32xf32>
    %329 = vector.broadcast %309 : vector<1x32xf32> to vector<8x32xf32>
    %330 = arith.mulf %328, %329 : vector<8x32xf32>
    %331 = vector.broadcast %310 : vector<1x32xf32> to vector<8x32xf32>
    %332 = arith.addf %330, %331 : vector<8x32xf32>
    %c0_117 = arith.constant 0 : index
    %c0_118 = arith.constant 0 : index
    %c0_119 = arith.constant 0 : index
    %333 = vector.load %arg10[%c0_117, %c0_118, %c0_119] : memref<1x8x32xf32, #tpu.memory_space<vmem>>, vector<1x8x32xf32>
    %334 = vector.shape_cast %333 : vector<1x8x32xf32> to vector<8x32xf32>
    %335 = vector.shape_cast %332 : vector<8x32xf32> to vector<1x8x32xf32>
    tpu.vector_store %arg10[%c0_117, %c0_118, %c0_119], %335 {strides = array<i32>} : memref<1x8x32xf32, #tpu.memory_space<vmem>>, vector<1x8x32xf32>,
    return
  }
  func.func @transform_0(%arg0: i32) -> (i32, i32, i32) {
    %c0_i32 = arith.constant 0 : i32
    %c0_i32_0 = arith.constant 0 : i32
    %c0_i32_1 = arith.constant 0 : i32
    return %arg0, %c0_i32, %c0_i32_0 : i32, i32, i32
  }
  func.func @transform_1(%arg0: i32) -> (i32, i32, i32) {
    %c0_i32 = arith.constant 0 : i32
    %c0_i32_0 = arith.constant 0 : i32
    %c0_i32_1 = arith.constant 0 : i32
    return %arg0, %c0_i32, %c0_i32_0 : i32, i32, i32
  }
  func.func @transform_2(%arg0: i32) -> (i32, i32, i32) {
    %c0_i32 = arith.constant 0 : i32
    %c0_i32_0 = arith.constant 0 : i32
    %c0_i32_1 = arith.constant 0 : i32
    %c0_i32_2 = arith.constant 0 : i32
    return %c0_i32, %c0_i32_0, %c0_i32_1 : i32, i32, i32
  }
  func.func @transform_3(%arg0: i32) -> (i32, i32, i32) {
    %c0_i32 = arith.constant 0 : i32
    %c0_i32_0 = arith.constant 0 : i32
    %c0_i32_1 = arith.constant 0 : i32
    %c0_i32_2 = arith.constant 0 : i32
    return %c0_i32, %c0_i32_0, %c0_i32_1 : i32, i32, i32
  }
  func.func @transform_4(%arg0: i32) -> (i32, i32, i32, i32) {
    %c0_i32 = arith.constant 0 : i32
    %c0_i32_0 = arith.constant 0 : i32
    %c0_i32_1 = arith.constant 0 : i32
    %c0_i32_2 = arith.constant 0 : i32
    %c0_i32_3 = arith.constant 0 : i32
    return %c0_i32, %c0_i32_0, %c0_i32_1, %c0_i32_2 : i32, i32, i32, i32
  }
  func.func @transform_5(%arg0: i32) -> (i32, i32, i32) {
    %c0_i32 = arith.constant 0 : i32
    %c0_i32_0 = arith.constant 0 : i32
    %c0_i32_1 = arith.constant 0 : i32
    %c0_i32_2 = arith.constant 0 : i32
    return %c0_i32, %c0_i32_0, %c0_i32_1 : i32, i32, i32
  }
  func.func @transform_6(%arg0: i32) -> (i32, i32, i32) {
    %c0_i32 = arith.constant 0 : i32
    %c0_i32_0 = arith.constant 0 : i32
    %c0_i32_1 = arith.constant 0 : i32
    %c0_i32_2 = arith.constant 0 : i32
    return %c0_i32, %c0_i32_0, %c0_i32_1 : i32, i32, i32
  }
  func.func @transform_7(%arg0: i32) -> (i32, i32, i32) {
    %c0_i32 = arith.constant 0 : i32
    %c0_i32_0 = arith.constant 0 : i32
    %c0_i32_1 = arith.constant 0 : i32
    %c0_i32_2 = arith.constant 0 : i32
    return %c0_i32, %c0_i32_0, %c0_i32_1 : i32, i32, i32
  }
  func.func @transform_8(%arg0: i32) -> (i32, i32, i32) {
    %c0_i32 = arith.constant 0 : i32
    %c0_i32_0 = arith.constant 0 : i32
    %c0_i32_1 = arith.constant 0 : i32
    %c0_i32_2 = arith.constant 0 : i32
    return %c0_i32, %c0_i32_0, %c0_i32_1 : i32, i32, i32
  }
  func.func @transform_9(%arg0: i32) -> (i32, i32, i32) {
    %c0_i32 = arith.constant 0 : i32
    %c0_i32_0 = arith.constant 0 : i32
    %c0_i32_1 = arith.constant 0 : i32
    return %arg0, %c0_i32, %c0_i32_0 : i32, i32, i32
  }
}

</mosaic_0001>

<bundles_post_ra>
// kernel: tpu_custom_call.1
= control target key start
LH: loop header
LB: loop body
LE: loop exit
PB: predicated region body
PF: predicated region fallthrough
CT: control target
= control target key end

     0   :  { %s4775_s0 = inlined_call_operand.hbm [shape: f32[2,8,32], index: 0, kind: input, shape index: {}]   ;;  %s4776_s1 = inlined_call_operand.hbm [shape: bf16[2,8,32], index: 1, kind: input, shape index: {}]   ;;  %s4777_s2 = inlined_call_operand.vmem [shape: f32[2,32,64], index: 2, kind: input, shape index: {}]   ;;  %s4778_s3 = inlined_call_operand.hbm [shape: f32[2,1,64], index: 3, kind: input, shape index: {}]   ;;  %s4779_s4 = inlined_call_operand.hbm [shape: bf16[2,2,32,32], index: 4, kind: input, shape index: {}]   ;;  %s4780_s5 = inlined_call_operand.vmem [shape: bf16[2,32,64], index: 5, kind: input, shape index: {}]   ;;  %s4781_s6 = inlined_call_operand.vmem [shape: bf16[2,64,32], index: 6, kind: input, shape index: {}]   ;;  %s4782_s7 = inlined_call_operand.vmem [shape: bf16[2,8,32], index: 7, kind: input, shape index: {}]   ;;  %s4783_s8 = inlined_call_operand.vmem [shape: bf16[2,1,64], index: 8, kind: input, shape index: {}]   ;;  %s4784_s9 = inlined_call_operand.hbm [shape: f32[2,8,32], index: 9, kind: output, shape index: {}]  }
   0x1   :  { %4790 = sst [smem:[#allocation18_spill]] %s4775_s0 }
   0x2   :  { %4791 = sst [smem:[#allocation19_spill]] %s4778_s3 }
   0x3   :  { %4792 = sst [smem:[#allocation20_spill]] %s4779_s4 }
   0x4   :  { %14 = vsyncpa [#allocation3], 0 }
   0x5   :  { %16 = vsyncpa [#allocation3 + $0x1], 0 }
   0x6   :  { %17 = vsyncpa [#allocation6], 0 }
   0x7   :  { %19 = vsyncpa [#allocation6 + $0x1], 0 }
   0x8   :  { %20 = vsyncpa [#allocation9], 0 }
   0x9   :  { %21 = vsyncpa [#allocation4], 0 }
   0xa   :  { %23 = vsyncpa [#allocation4 + $0x1], 0  ;;  %s4159_s30 = smov 0   ;;  %s4161_s10 = smov 0  }
   0xb   :  { %s4163_s11 = smov 0   ;;  %s4165_s12 = smov 0  }
   0xc LB: > { %4793 = sst [smem:[#allocation16_spill]] %s4085_s11  ;;  %s4180_s13 = sadd.s32 4294967295, %s4089_s12   ;;  %s4089_s12 = sphi %s4165_s12, %s4820_s12   ;;  %s4085_s11 = sphi %s4163_s11, %s4817_s11   ;;  %s4081_s10 = sphi %s4161_s10, %s4819_s10   ;;  %s4077_s30 = sphi %s4159_s30, %s4818_s30  }
   0xd   : > { %s3285_s14 = sadd.s32 4294967294, %s4089_s12   ;;  %p49_p0 = scmp.ne.s32.totalorder %s4081_s10, %s4077_s30 }
   0xe   : > { %p4785_p1 = scmp.eq.s32.totalorder %s4180_s13, 0  ;;  %p252_p3 = scmp.eq.s32.totalorder %s3285_s14, 1 }
   0xf   : > { %p3286_p5 = scmp.ge.s32.totalorder %s4089_s12, 1  ;;  %p259_p7 = scmp.lt.s32.totalorder %s4089_s12, 3 }
  0x10   : > { %p4189_p4 = por %p4785_p1, %p49_p0  ;;  %p4194_p6 = por %p252_p3, %p49_p0 }
  0x11   : > { %p4199_p8 = pnand %p3286_p5, %p259_p7  ;;  %s4091_s18 = smov [#allocation7]  }
  0x12   : > { %s4794_s15 = scalar_select %p4189_p4, 1, 0 }
  0x13   : > { %s4795_s16 = scalar_select %p4194_p6, 1, 0 }
  0x14   : > { %s4796_s17 = scalar_select %p4199_p8, 1, 0 }
  0x15   : > { %s274_s19 = sshll.u32 %s4091_s18, 4  ;;  %p3794_p9 = pneg %p4199_p8  ;;  %s275_s19 = int_to_ptr.vmem [resolvable:$true] %s274_s19 }
  0x16   : > { %s4092_s21 = smov [#allocation8]   ;;  %s3916_s23 = scalar_lea.vmem %s275_s19, 32 }
  0x17   : > { %p4208_p11 = pnand %p3794_p9, %p4785_p1  ;;  %s287_s22 = sshll.u32 %s4092_s21, 4  ;;  %s288_s22 = int_to_ptr.vmem [resolvable:$true] %s287_s22 }
  0x18   : > { %p3917_p13 = scmp.ne.s32.totalorder %s275_s19, %s3916_s23  ;;  %p3924_p5 = scmp.lt.s32.totalorder %s275_s19, %s275_s19 }
  0x19   : > { %p3907_p12 = pneg %p4208_p11  ;;  %p3925_p7 = scmp.lt.s32.totalorder %s3916_s23, %s3916_s23 }
  0x1b   : > { %p3919_p0 = pnand %p3917_p13, %p3907_p12  ;;  %p3926_p10 = por %p3925_p7, %p3924_p5 }
  0x1d   : > { %p3920_p3 = pneg %p3919_p0 }
  0x1f   : > { %p3927_p9 = pnand %p3926_p10, %p3920_p3 }
  0x21   : > { %3930 = shalt.err (!%p3927_p9)
}
  0x22   : > { %s4093_s24 = smov 16   ;;  %s4094_s25 = smov 1  }
  0x23   : > { %s4798_s3 = sld [smem:[#allocation19_spill]]  ;;  %s3942_s28 = scalar_lea.vmem %s288_s22, 1024 }
  0x24   : > { %p3943_p1 = scmp.ne.s32.totalorder %s288_s22, %s3942_s28  ;;  %p3950_p2 = scmp.lt.s32.totalorder %s288_s22, %s288_s22 }
  0x25   : > { %p3951_p6 = scmp.lt.s32.totalorder %s3942_s28, %s3942_s28 }
  0x26   : > { %p3945_p13 = pnand %p3943_p1, %p3907_p12 }
  0x27   : > { %p3952_p5 = por %p3951_p6, %p3950_p2 }
  0x28   : > { %p3946_p0 = pneg %p3945_p13 }
  0x29   : > { %3797 = dma.hbm_to_vmem [thread:$0]  (!%p4208_p11), %s4798_s3, 32, %s275_s19, [#allocation6], %s4093_s24, %s4093_s24, %s4094_s25  }
  0x2a   : > { %p3953_p10 = pnand %p3952_p5, %p3946_p0 }
  0x2c   : > { %3956 = shalt.err (!%p3953_p10)
}
  0x2d   : > { %s4095_s29 = smov 64   ;;  %s4096_s14 = smov 4  }
  0x2e   : > { %s4799_s4 = sld [smem:[#allocation20_spill]]  ;;  %s4231_s21 = sadd.s32 1, %s4089_s12  }
  0x2f   : > { %s33_s23 = ssub.s32 %s4089_s12, %s4231_s21  ;;  %s36_s24 = sadd.s32 1, %s4085_s11 }
  0x30   : > { %p34_p1 = scmp.eq.s32.totalorder %s33_s23, 0  ;;  %p43_p2 = scmp.ne.s32.totalorder %s4085_s11, %s4081_s10 }
  0x31   : > { %p44_p6 = scmp.eq.s32.totalorder %s4089_s12, 0  ;;  %p4801_p3 = scmp.eq.s32.totalorder %s4180_s13, 1 }
  0x32   : > { %s4240_s25 = scalar_select %p34_p1, %s4085_s11, %s36_s24  }
  0x33   : > { %p45_p12 = por %p44_p6, %p43_p2  ;;  %p4244_p7 = por %p4801_p3, %p43_p2 }
  0x34   : > { %3800 = dma.hbm_to_vmem [thread:$0]  (!%p4208_p11), %s4799_s4, 1024, %s288_s22, [#allocation9], %s4095_s29, %s4095_s29, %s4096_s14  }
  0x35   : > { %4800 = sst [smem:[#allocation17_spill]] %s4240_s25  ;;  %p3814_p9 = scmp.lt.s32.totalorder %s4089_s12, 2 }
  0x36   : > { %s4802_s26 = scalar_select %p4244_p7, 1, 0 }
  0x37   : > { %s4250_s20 = sand.u32 1, %s4085_s11   ;;  %s3291_s27 = sshll.u32 %s4089_s12, 7 }
  0x38   : > { %s3290_s22 = sshll.u32 %s4250_s20, 3  ;;  %s4803_s0 = sld [smem:[#allocation18_spill]] }
  0x39   : > { %s317_s18 = scalar_lea.vmem [#allocation2], %s3290_s22  ;;  %p4261_p11 = pnand %p3814_p9, %p45_p12 }
  0x3a   : > { %s324_s19 = sshll.u32 %s317_s18, 4  ;;  %s314_s4 = scalar_lea.sflag [#allocation3], %s4250_s20  ;;  %s4259_s19 = int_to_ptr.vmem [resolvable:$true] %s324_s19 }
  0x3b   : > { %p3959_p0 = pneg %p4261_p11 }
  0x3e   : > { %s4257_s14 = scalar_lea.hbm %s4803_s0, %s3291_s27  ;;  %s3962_s28 = scalar_lea.hbm %s4803_s0, 256 }
  0x3f   : > { %s3957_s25 = scalar_lea.hbm %s4257_s14, 128  ;;  %p3963_p1 = scmp.lt.s32.totalorder %s4257_s14, %s4803_s0 }
  0x40   : > { %p3958_p13 = scmp.ne.s32.totalorder %s4257_s14, %s3957_s25  ;;  %p3964_p2 = scmp.lt.s32.totalorder %s3962_s28, %s3957_s25 }
  0x42   : > { %p3960_p5 = pnand %p3959_p0, %p3958_p13  ;;  %p3965_p6 = por %p3964_p2, %p3963_p1 }
  0x44   : > { %p3961_p10 = pneg %p3960_p5 }
  0x46   : > { %p3966_p12 = pnand %p3965_p6, %p3961_p10 }
  0x48   : > { %3969 = shalt.err (!%p3966_p12)
}
  0x49   : > { %s3970_s24 = scalar_lea.vmem %s4259_s19, 128  ;;  %s4097_s22 = smov [#allocation2]  }
  0x4a   : > { %p3971_p3 = scmp.ne.s32.totalorder %s4259_s19, %s3970_s24  ;;  %s3975_s27 = sshll.u32 %s4097_s22, 4  ;;  %s3976_s27 = int_to_ptr.vmem [resolvable:$false] %s3975_s27 }
  0x4b   : > { %s3977_s3 = scalar_lea.vmem %s3976_s27, 256  ;;  %p3978_p5 = scmp.lt.s32.totalorder %s4259_s19, %s3976_s27 }
  0x4c   : > { %p3973_p9 = pnand %p3971_p3, %p3959_p0  ;;  %p3979_p7 = scmp.lt.s32.totalorder %s3977_s3, %s3970_s24 }
  0x4e   : > { %p3974_p13 = pneg %p3973_p9  ;;  %p3980_p4 = por %p3979_p7, %p3978_p5 }
  0x50   : > { %p3981_p1 = pnand %p3980_p4, %p3974_p13 }
  0x52   : > { %3984 = shalt.err (!%p3981_p1)
}
  0x53   : > { %3804 = dma.hbm_to_vmem [thread:$0]  (!%p4261_p11), %s4257_s14, 128, %s4259_s19, %s314_s4  }
  0x54   : > { %s3293_s25 = sshll.u32 %s4089_s12, 6  ;;  %s4805_s22 = sshll.u32 %s4250_s20, 2 }
  0x55   : > { %s4296_s18 = scalar_lea.hbm %s4776_s1, %s3293_s25  ;;  %s335_s3 = scalar_lea.vmem [#allocation5], %s4805_s22 }
  0x56   : > { %s342_s24 = sshll.u32 %s335_s3, 4  ;;  %s4806_s27 = sand.u32 1, %s4089_s12   ;;  %s343_s24 = int_to_ptr.vmem [resolvable:$true] %s342_s24 }
  0x57   : > { %s332_s0 = scalar_lea.sflag [#allocation6], %s4806_s27  ;;  %s3985_s11 = scalar_lea.hbm %s4296_s18, 64 }
  0x58   : > { %p3986_p4 = scmp.ne.s32.totalorder %s4296_s18, %s3985_s11  ;;  %s3990_s19 = scalar_lea.hbm %s4776_s1, 128 }
  0x59   : > { %p3991_p2 = scmp.lt.s32.totalorder %s4296_s18, %s4776_s1  ;;  %p3992_p6 = scmp.lt.s32.totalorder %s3990_s19, %s3985_s11 }
  0x5a   : > { %p3988_p7 = pnand %p3986_p4, %p3959_p0 }
  0x5b   : > { %p3993_p12 = por %p3992_p6, %p3991_p2 }
  0x5c   : > { %p3989_p10 = pneg %p3988_p7 }
  0x5e   : > { %p3994_p3 = pnand %p3993_p12, %p3989_p10 }
  0x60   : > { %3997 = shalt.err (!%p3994_p3)
}
  0x61   : > { %s3998_s28 = scalar_lea.vmem %s343_s24, 64  ;;  %s4098_s29 = smov [#allocation5]  }
  0x62   : > { %p3999_p9 = scmp.ne.s32.totalorder %s343_s24, %s3998_s28  ;;  %s4003_s22 = sshll.u32 %s4098_s29, 4  ;;  %s4004_s22 = int_to_ptr.vmem [resolvable:$false] %s4003_s22 }
  0x63   : > { %s4005_s3 = scalar_lea.vmem %s4004_s22, 128  ;;  %p4006_p1 = scmp.lt.s32.totalorder %s343_s24, %s4004_s22 }
  0x64   : > { %p4001_p13 = pnand %p3999_p9, %p3959_p0  ;;  %p4007_p4 = scmp.lt.s32.totalorder %s4005_s3, %s3998_s28 }
  0x66   : > { %p4002_p5 = pneg %p4001_p13  ;;  %p4008_p7 = por %p4007_p4, %p4006_p1 }
  0x68   : > { %p4009_p8 = pnand %p4008_p7, %p4002_p5 }
  0x6a   : > { %4012 = shalt.err (!%p4009_p8)
}
  0x6b   : > { %3807 = dma.hbm_to_vmem [thread:$0]  (!%p4261_p11), %s4296_s18, 64, %s343_s24, %s332_s0  }
  0x6c   : > { %p4807_p10 = scmp.ne.s32.totalorder %s4796_s17, 0 }
  0x6d   : > { %s4323_s11 = sand.u32 (!%p4807_p10), 1, %s4081_s10   ;;  %p4808_p0 = scmp.ne.s32.totalorder (!%p4807_p10), %s4794_s15, 0 }
  0x6e   : > { %351 = sbr.rel (%p4807_p10) target bundleno = 7526 (0x1d66), region = 56  ;;  %s3295_s27 = sshll.u32 (!%p4807_p10), %s4323_s11, 3 }
  0x6f   : > { %s354_s4 = scalar_lea.sflag (!%p4807_p10), [#allocation3], %s4323_s11  ;;  %s357_s14 = scalar_lea.vmem (!%p4807_p10), [#allocation2], %s3295_s27 }
  0x73   : > { %4056 = dma.done.wait (%p4808_p0), %s354_s4, 128  }
  0x74   : > { %4058 = vsyncadd (%p4808_p0), %s354_s4, 4294967168  ;;  %s362_s0 = sand.u32 1, %s4180_s13   ;;  %s3296_s17 = sshll.u32 %s4323_s11, 2 }
  0x75   : > { %s363_s23 = scalar_lea.sflag [#allocation6], %s362_s0  ;;  %s366_s18 = scalar_lea.vmem [#allocation5], %s3296_s17 }
  0x76   : > { %4060 = dma.done.wait (%p4808_p0), %s363_s23, 64  }
  0x77   : > { %4062 = vsyncadd (%p4808_p0), %s363_s23, 4294967232  ;;  %p4809_p8 = scmp.eq.s32.totalorder %s4180_s13, 0 }
  0x79   : > { %4064 = dma.done.wait (%p4809_p8), [#allocation6], 32   ;;  %p4810_p11 = pmov %p4809_p8 }
  0x7a   : > { %p4811_p2 = pmov %p4809_p8 }
  0x7b   : > { %4066 = vsyncadd (%p4810_p11), [#allocation6], 4294967264 }
  0x7c   : > { %4068 = dma.done.wait (%p4811_p2), [#allocation9], 1024   ;;  %p4812_p6 = pmov %p4811_p2 }
  0x7d   : > { %v4099_v0 = vmov 0.0   ;;  %vm4100_vm0 = vmmov 0   ;;  %v420_v1 = vld [vmem:[%s4777_s2 + $0x18] sm:$0xff]  ;;  %v419_v2 = vld [vmem:[%s4777_s2 + $0x10] sm:$0xff]  ;;  %v4359_v3 = vld [vmem:[%s357_s14] sm:$0xff]  ;;  %vm473_vm1 = vcmask 261120   ;;  %v547_v29 = vlaneseq }
  0x7e   : > { %4070 = vsyncadd (%p4812_p6), [#allocation9], 4294966272  ;;  %3556 = vmatprep.subr.mxu0 %v4099_v0  ;;  %3564 = vmatprep.mubr.msk.f32.mxu0 %vm4100_vm0, %v4099_v0  ;;  %v4361_v4 = vld [vmem:[%s366_s18] sm:$0xf]  ;;  %v418_v5 = vld [vmem:[%s4777_s2 + $0x8] sm:$0xff]  ;;  %s4101_s3 = smov 88  }
  0x7f   : > { %3567 = vmatprep.subr.mxu1 %v4099_v0  ;;  %3575 = vmatprep.mubr.msk.f32.mxu1 %vm4100_vm0, %v4099_v0  ;;  %v416_v6 = vunpack.c.l.bf16 %v4361_v4  ;;  %v417_v7 = vld [vmem:[%s4777_s2] sm:$0xff]  ;;  %v3300_v9 = vld [vmem:[#allocation7] ss:$0 sm:$0xff]  ;;  %s4102_s4 = smov 96   ;;  %vm627_vm2 = vcmask 64512   ;;  %v4407_v32 = vshrl.u32 %v547_v29, 7 }
  0x80   : > { %3557 = vmatpush3.msra.mxu0 %v420_v1  ;;  %v3444_v14 = vld [vmem:[#allocation8 + $0x8] sm:$0xff]   ;;  %v3365_v15 = vld [vmem:[#allocation8] sm:$0xff]   ;;  %s4103_s17 = smov 120   ;;  %s4104_s23 = smov 112   ;;  %v3445_v52 = vld [vmem:[#allocation8 + $0x10] sm:$0xff]   ;;  %vm1688_vm3 = vcmask 523264  }
  0x81   : > { %3558 = vmatprep.subr.mxu0 %v4099_v0  ;;  %v466_v8 = vadd.f32 %v416_v6, %v4359_v3  ;;  %v3370_v16 = vunpack.c.l.bf16 %v3444_v14  ;;  %v3371_v17 = vunpack.c.h.bf16 %v3444_v14  ;;  %v3367_v18 = vunpack.c.h.bf16 %v3365_v15  ;;  %v462_v28 = vld [vmem:[%s4782_s7] sm:$0xf]  ;;  %s4105_s18 = smov 80   ;;  %s4106_s15 = smov 104   ;;  %v3339_v4 = vld [vmem:[#allocation7 + $0x1] ss:$0 sm:$0xff] }
  0x82   : > { %3559 = vmatpush3.msra.mxu0 %v419_v2  ;;  %v3366_v19 = vunpack.c.l.bf16 %v3365_v15  ;;  %v4405_v31 = vunpack.c.l.bf16 %v462_v28  ;;  %v4412_v34 = vsub.s32 0, %v4407_v32  ;;  %v3375_v53 = vunpack.c.h.bf16 %v3445_v52  ;;  %s4107_s24 = smov 72   ;;  %s3361_s0 = sshll.u32 %s4180_s13, 7 }
  0x83   : > { %3560 = vmatprep.subr.mxu0 %v4099_v0  ;;  %3568 = vmatpush3.msra.mxu1 %v3371_v17  ;;  %v3374_v57 = vunpack.c.l.bf16 %v3445_v52  ;;  %p4813_p3 = scmp.ne.s32.totalorder %s4802_s26, 0  ;;  %s4108_s19 = smov [#allocation10]  }
  0x84   : > { %3561 = vmatpush3.msra.mxu0 %v418_v5  ;;  %3569 = vmatprep.subr.mxu1 %v4099_v0  ;;  %v550_v35 = vrot.slane %v4405_v31, %v4412_v34  ;;  %s4017_s13 = sshll.u32 %s4108_s19, 4  ;;  %s4018_s13 = int_to_ptr.vmem [resolvable:$false] %s4017_s13 }
  0x85   : > { %3562 = vmatprep.subr.mxu0 %v4099_v0  ;;  %3570 = vmatpush3.msra.mxu1 %v3370_v16 }
  0x86   : > { %3563 = vmatpush3.msra.mxu0 %v417_v7  ;;  %3571 = vmatprep.subr.mxu1 %v4099_v0 }
  0x87   : > { %3565 = vmatmul.mubr.msk.f32.vlgmr.msra.gmra.mxu0 %vm473_vm1, %v466_v8  ;;  %3578 = vmatprep.subr.mxu0 %v4099_v0 }
  0x88   : > { %3580 = vmatprep.mubr.msk.f32.mxu0 %vm4100_vm0, %v4099_v0  ;;  %3572 = vmatpush3.msra.mxu1 %v3367_v18 }
  0x89   : > { %3573 = vmatprep.subr.mxu1 %v4099_v0 }
  0x8a   : > { %3574 = vmatpush3.msra.mxu1 %v3366_v19 }
  0x8b   : > { %3576 = vmatmul.mubr.msk.f32.vlgmr.msra.gmra.mxu1 %vm473_vm1, %v4359_v3  ;;  %3593 = vmatprep.subr.mxu1 %v4099_v0 }
  0x8c   : > { %3595 = vmatprep.mubr.msk.f32.mxu1 %vm4100_vm0, %v4099_v0 }
 0x147   : > { %v543_v10 = vpop.f32.mrf.mxu0 }
 0x148   : > { %v4380_v11 = vadd.f32 %v3300_v9, %v543_v10 }
 0x149   : > { %v3566_v12 = vpop.f32.mrf.mxu0 }
 0x14a   : > { %788 = vrot.lane.b32.xlu1 %v4380_v11, %s4101_s3  ;;  %625 = vrot.lane.b32.xlu0 %v4380_v11, %s4102_s4 }
 0x14b   : > { %v620_v30 = vpop.f32.mrf.mxu1 }
 0x14c   : > { %v4416_v36 = vadd.f32 %v620_v30, %v550_v35 }
 0x14d   : > { %v3577_v33 = vpop.f32.mrf.mxu1 }
 0x1bc   : > { %v626_v13 = vpop.permute.xlu0 %625  ;;  %v789_v37 = vpop.permute.xlu1 %788 }
 0x1bd   : > { %3579 = vmatpush3.xpose.msk.msra.mxu0 %vm627_vm2, %v626_v13 }
 0x1be   : > { %3583 = vmatprep.subr.mxu0 %v4099_v0 }
 0x1c0   : > { %3581 = vmatmul.mubr.msk.f32.vlgmr.msra.gmra.mxu0 %vm627_vm2, %v4380_v11 }
 0x1c1   : > { %3585 = vmatprep.mubr.msk.f32.mxu0 %vm4100_vm0, %v4099_v0  ;;  %3584 = vmatpush3.msra.mxu0 %v4416_v36 }
 0x1c2   : > { %3588 = vmatprep.subr.mxu0 %v4099_v0 }
 0x280   : > { %v698_v20 = vpop.f32.mrf.mxu0 }
 0x281   : > { %v702_v21 = vsel %vm627_vm2, %v698_v20, -inf }
 0x282   : > { %703 = vmax.xlane.f32.xlu0 %v702_v21  ;;  %v3582_v22 = vpop.f32.mrf.mxu0 }
 0x30b   : > { %v704_v23 = vpop.xlane.xlu0 %703 }
 0x30c   : > { %v705_v24 = vsub.f32 %v698_v20, %v704_v23 }
 0x30e   : > { %v706_v25 = vmul.f32 1.442695, %v705_v24 }
 0x310   : > { %3865 = vpow2.f32 %v706_v25 }
 0x31d   : > { %v3866_v26 = vpop.eup %3865 }
 0x31e   : > { %v708_v27 = vsel %vm627_vm2, %v3866_v26, 0.0 }
 0x31f   : > { %709 = vadd.xlane.f32.xlu1 %v708_v27 }
 0x330   : > { %786 = vrot.lane.b32.xlu1 %v4380_v11, %s4103_s17 }
 0x3a8   : > { %v710_v38 = vpop.xlane.xlu1 %709 }
 0x3a9   : > { %3867 = vrcp.f32 %v710_v38 }
 0x3ac   : > { %v787_v41 = vpop.permute.xlu1 %786 }
 0x3b6   : > { %v3868_v39 = vpop.eup %3867 }
 0x3b7   : > { %v712_v40 = vmul.f32 %v3868_v39, %v3866_v26 }
 0x3b9   : > { %3586 = vmatmul.mubr.msk.f32.vlgmr.msra.gmra.mxu0 %vm627_vm2, %v712_v40 }
 0x3ba   : > { %3589 = vmatpush3.xpose.msk.msra.mxu0 %vm627_vm2, %v789_v37  ;;  %3590 = vmatprep.mubr.msk.f32.mxu0 %vm4100_vm0, %v4099_v0 }
 0x3bb   : > { %3598 = vmatprep.subr.mxu0 %v4099_v0 }
 0x3bd   : > { %3591 = vmatmul.mubr.msk.f32.vlgmr.msra.gmra.mxu0 %vm627_vm2, %v787_v41 }
 0x3be   : > { %3600 = vmatprep.mubr.msk.f32.mxu0 %vm4100_vm0, %v4099_v0  ;;  %3599 = vmatpush3.msra.mxu0 %v3375_v53 }
 0x3bf   : > { %3608 = vmatprep.subr.mxu0 %v4099_v0 }
 0x479   : > { %v782_v42 = vpop.f32.mrf.mxu0 }
 0x47b   : > { %v3587_v43 = vpop.f32.mrf.mxu0 }
 0x47d   : > { %v860_v44 = vpop.f32.mrf.mxu0 }
 0x47e   : > { %v864_v45 = vsel %vm627_vm2, %v860_v44, -inf }
 0x47f   : > { %865 = vmax.xlane.f32.xlu1 %v864_v45  ;;  %v3592_v46 = vpop.f32.mrf.mxu0 }
 0x490   : > { %1098 = vrot.lane.b32.xlu1 %v4380_v11, %s4104_s23 }
 0x508   : > { %v866_v47 = vpop.xlane.xlu1 %865 }
 0x509   : > { %v867_v48 = vsub.f32 %v860_v44, %v866_v47  ;;  %v1578_v47 = vsub.s32 1, %v4407_v32 }
 0x50b   : > { %v868_v49 = vmul.f32 1.442695, %v867_v48  ;;  %v1579_v48 = vrot.slane %v4405_v31, %v1578_v47 }
 0x50c   : > { %v1099_v62 = vpop.permute.xlu1 %1098 }
 0x50d   : > { %3869 = vpow2.f32 %v868_v49 }
 0x51a   : > { %v3870_v50 = vpop.eup %3869 }
 0x51b   : > { %v870_v51 = vsel %vm627_vm2, %v3870_v50, 0.0 }
 0x51c   : > { %871 = vadd.xlane.f32.xlu0 %v870_v51 }
 0x532   : > { %876 = vrot.lane.b32.xlu0 %v4416_v36, %s4103_s17 }
 0x536   : > { %1100 = vrot.lane.b32.xlu0 %v4380_v11, %s4105_s18 }
 0x5a5   : > { %v872_v54 = vpop.xlane.xlu0 %871 }
 0x5a6   : > { %3871 = vrcp.f32 %v872_v54 }
 0x5a9   : > { %v877_v55 = vpop.permute.xlu0 %876 }
 0x5aa   : > { %3594 = vmatpush3.msra.mxu1 %v877_v55 }
 0x5ab   : > { %3603 = vmatprep.subr.mxu1 %v4099_v0 }
 0x5ad   : > { %v1101_v60 = vpop.permute.xlu0 %1100 }
 0x5b3   : > { %v3872_v56 = vpop.eup %3871 }
 0x5b4   : > { %v874_v58 = vmul.f32 %v3872_v56, %v3870_v50 }
 0x5b6   : > { %3596 = vmatmul.mubr.msk.f32.vlgmr.msra.gmra.mxu1 %vm627_vm2, %v874_v58 }
 0x5b7   : > { %3604 = vmatpush3.msra.mxu1 %v3374_v57  ;;  %3605 = vmatprep.mubr.msk.f32.mxu1 %vm4100_vm0, %v4099_v0 }
 0x5b8   : > { %3613 = vmatprep.subr.mxu1 %v4099_v0 }
 0x5ba   : > { %3606 = vmatmul.mubr.msk.f32.vlgmr.msra.gmra.mxu1 %vm627_vm2, %v782_v42 }
 0x5bb   : > { %3615 = vmatprep.mubr.msk.f32.mxu1 %vm4100_vm0, %v4099_v0 }
 0x676   : > { %v948_v59 = vpop.f32.mrf.mxu1 }
 0x677   : > { %3601 = vmatmul.mubr.msk.f32.vlgmr.msra.gmra.mxu0 %vm627_vm2, %v948_v59 }
 0x678   : > { %3609 = vmatpush3.xpose.msk.msra.mxu0 %vm627_vm2, %v1101_v60  ;;  %v3597_v61 = vpop.f32.mrf.mxu1  ;;  %3610 = vmatprep.mubr.msk.f32.mxu0 %vm4100_vm0, %v4099_v0  ;;  %v3447_v60 = vld [vmem:[%s4780_s5 + $0x8] sm:$0xff]  }
 0x679   : > { %3618 = vmatprep.subr.mxu0 %v4099_v0  ;;  %v3387_v61 = vunpack.c.h.bf16 %v3447_v60 }
 0x67a   : > { %v1094_v63 = vpop.f32.mrf.mxu1 }
 0x67b   : > { %3611 = vmatmul.mubr.msk.f32.vlgmr.msra.gmra.mxu0 %vm627_vm2, %v1099_v62  ;;  %v3386_v62 = vunpack.c.l.bf16 %v3447_v60 }
 0x67c   : > { %v3607_v1 = vpop.f32.mrf.mxu1  ;;  %3620 = vmatprep.mubr.msk.f32.mxu0 %vm4100_vm0, %v4099_v0 }
 0x737   : > { %v1021_v2 = vpop.f32.mrf.mxu0 }
 0x738   : > { %v1095_v39 = vadd.f32 %v1094_v63, %v1021_v2  ;;  %v3450_v2 = vld [vmem:[%s4781_s6 + $0x18] sm:$0xff]  }
 0x739   : > { %v3602_v5 = vpop.f32.mrf.mxu0 }
 0x73a   : > { %v3449_v5 = vld [vmem:[%s4781_s6 + $0x10] sm:$0xff]  }
 0x73b   : > { %v1172_v7 = vpop.f32.mrf.mxu0 }
 0x73c   : > { %v1176_v8 = vsel %vm627_vm2, %v1172_v7, -inf }
 0x73d   : > { %1177 = vmax.xlane.f32.xlu0 %v1176_v8  ;;  %v3612_v9 = vpop.f32.mrf.mxu0  ;;  %v3402_v8 = vunpack.c.l.bf16 %v3450_v2 }
 0x73e   : > { %v3399_v9 = vunpack.c.h.bf16 %v3449_v5 }
 0x753   : > { %1187 = vrot.lane.b32.xlu0 %v4416_v36, %s4104_s23 }
 0x757   : > { %1337 = vrot.lane.b32.xlu0 %v4380_v11, %s4106_s15 }
 0x7c6   : > { %v1178_v10 = vpop.xlane.xlu0 %1177 }
 0x7c7   : > { %v1179_v12 = vsub.f32 %v1172_v7, %v1178_v10  ;;  %v3403_v7 = vunpack.c.h.bf16 %v3450_v2  ;;  %v3448_v10 = vld [vmem:[%s4781_s6 + $0x8] sm:$0xff]  }
 0x7c9   : > { %v1180_v13 = vmul.f32 1.442695, %v1179_v12  ;;  %v3398_v12 = vunpack.c.l.bf16 %v3449_v5 }
 0x7ca   : > { %v1188_v14 = vpop.permute.xlu0 %1187 }
 0x7cb   : > { %3873 = vpow2.f32 %v1180_v13  ;;  %3614 = vmatpush3.msra.mxu1 %v1188_v14  ;;  %v3395_v13 = vunpack.c.h.bf16 %v3448_v10 }
 0x7cc   : > { %3623 = vmatprep.subr.mxu1 %v4099_v0 }
 0x7ce   : > { %v1338_v21 = vpop.permute.xlu0 %1337 }
 0x7d8   : > { %v3874_v15 = vpop.eup %3873 }
 0x7d9   : > { %v1182_v16 = vsel %vm627_vm2, %v3874_v15, 0.0 }
 0x7da   : > { %1183 = vadd.xlane.f32.xlu1 %v1182_v16 }
 0x7eb   : > { %1339 = vrot.lane.b32.xlu1 %v4380_v11, %s4107_s24  ;;  %v3446_v11 = vld [vmem:[#allocation8 + $0x18] sm:$0xff]  }
 0x7ec   : > { %v3378_v22 = vunpack.c.l.bf16 %v3446_v11  ;;  %v3379_v38 = vunpack.c.h.bf16 %v3446_v11 }
 0x7ee   : > { %3619 = vmatpush3.msra.mxu0 %v3378_v22 }
 0x7ef   : > { %3628 = vmatprep.subr.mxu0 %v4099_v0 }
 0x863   : > { %v1184_v17 = vpop.xlane.xlu1 %1183 }
 0x864   : > { %3875 = vrcp.f32 %v1184_v17  ;;  %v1598_v17 = vsub.s32 2, %v4407_v32 }
 0x867   : > { %v1340_v20 = vpop.permute.xlu1 %1339 }
 0x871   : > { %v3876_v18 = vpop.eup %3875 }
 0x872   : > { %v1186_v19 = vmul.f32 %v3876_v18, %v3874_v15  ;;  %v1603_v18 = vsub.s32 3, %v4407_v32 }
 0x874   : > { %3616 = vmatmul.mubr.msk.f32.vlgmr.msra.gmra.mxu1 %vm627_vm2, %v1186_v19  ;;  %v1599_v19 = vrot.slane %v4405_v31, %v1598_v17  ;;  %v1604_v11 = vrot.slane %v4405_v31, %v1603_v18 }
 0x875   : > { %3624 = vmatpush3.xpose.msk.msra.mxu1 %vm627_vm2, %v1340_v20  ;;  %3625 = vmatprep.mubr.msk.f32.mxu1 %vm4100_vm0, %v4099_v0 }
 0x876   : > { %3633 = vmatprep.subr.mxu1 %v4099_v0 }
 0x878   : > { %3626 = vmatmul.mubr.msk.f32.vlgmr.msra.gmra.mxu1 %vm627_vm2, %v1338_v21 }
 0x879   : > { %3635 = vmatprep.mubr.msk.f32.mxu1 %vm4100_vm0, %v4099_v0  ;;  %3634 = vmatpush3.msra.mxu1 %v3379_v38 }
 0x87a   : > { %3649 = vmatprep.subr.mxu1 %v4099_v0 }
 0x934   : > { %v1259_v23 = vpop.f32.mrf.mxu1 }
 0x935   : > { %3621 = vmatmul.mubr.msk.f32.vlgmr.msra.gmra.mxu0 %vm627_vm2, %v1259_v23 }
 0x936   : > { %v3617_v24 = vpop.f32.mrf.mxu1  ;;  %3630 = vmatprep.mubr.msk.f32.mxu0 %vm4100_vm0, %v4099_v0 }
 0x937   : > { %v3394_v24 = vunpack.c.l.bf16 %v3448_v10 }
 0x938   : > { %v1411_v25 = vpop.f32.mrf.mxu1 }
 0x939   : > { %v1415_v26 = vsel %vm627_vm2, %v1411_v25, -inf }
 0x93a   : > { %1416 = vmax.xlane.f32.xlu0 %v1415_v26  ;;  %v3627_v27 = vpop.f32.mrf.mxu1 }
 0x950   : > { %1426 = vrot.lane.b32.xlu0 %v4416_v36, %s4106_s15 }
 0x9c3   : > { %v1417_v28 = vpop.xlane.xlu0 %1416 }
 0x9c4   : > { %v1418_v29 = vsub.f32 %v1411_v25, %v1417_v28  ;;  %v3389_v25 = vld [vmem:[%s4781_s6] sm:$0xff]  }
 0x9c5   : > { %v3391_v26 = vunpack.c.h.bf16 %v3389_v25  ;;  %v3390_v27 = vunpack.c.l.bf16 %v3389_v25  ;;  %v464_v28 = vld [vmem:[%s4783_s8] sm:$0x1] }
 0x9c6   : > { %v1419_v30 = vmul.f32 1.442695, %v1418_v29  ;;  %v465_v29 = vunpack.c.l.bf16 %v464_v28 }
 0x9c7   : > { %v1427_v33 = vpop.permute.xlu0 %1426 }
 0x9c8   : > { %3877 = vpow2.f32 %v1419_v30  ;;  %3629 = vmatpush3.msra.mxu0 %v1427_v33  ;;  %v1609_v30 = vrot.slane %v465_v29, %v4412_v34 }
 0x9c9   : > { %3638 = vmatprep.subr.mxu0 %v4099_v0 }
 0x9d5   : > { %v3878_v35 = vpop.eup %3877 }
 0x9d6   : > { %v1421_v37 = vsel %vm627_vm2, %v3878_v35, 0.0 }
 0x9d7   : > { %1422 = vadd.xlane.f32.xlu1 %v1421_v37 }
 0x9f5   : > { %v1332_v40 = vpop.f32.mrf.mxu0 }
 0x9f6   : > { %v1336_v41 = vadd.f32 %v1332_v40, %v1095_v39  ;;  %v1686_v39 = vsub.s32 6, %v4407_v32 }
 0x9f7   : > { %v3622_v36 = vpop.f32.mrf.mxu0 }
 0x9f8   : > { %v1687_v40 = vrot.slane %v4405_v31, %v1686_v39 }
 0xa60   : > { %v1423_v42 = vpop.xlane.xlu1 %1422 }
 0xa61   : > { %3879 = vrcp.f32 %v1423_v42 }
 0xa6e   : > { %v3880_v43 = vpop.eup %3879 }
 0xa6f   : > { %v1425_v44 = vmul.f32 %v3880_v43, %v3878_v35 }
 0xa71   : > { %3631 = vmatmul.mubr.msk.f32.vlgmr.msra.gmra.mxu0 %vm627_vm2, %v1425_v44 }
 0xa72   : > { %3646 = vmatprep.mubr.msk.f32.mxu0 %vm4100_vm0, %v4099_v0  ;;  %3639 = vmatpush3.msra.mxu0 %v3387_v61 }
 0xa73   : > { %3640 = vmatprep.subr.mxu0 %v4099_v0 }
 0xa74   : > { %3641 = vmatpush3.msra.mxu0 %v3386_v62 }
 0xa75   : > { %3642 = vmatprep.subr.mxu0 %v4099_v0 }
 0xb31   : > { %v1498_v45 = vpop.f32.mrf.mxu0 }
 0xb32   : > { %3636 = vmatmul.mubr.msk.f32.vlgmr.msra.gmra.mxu1 %vm627_vm2, %v1498_v45 }
 0xb33   : > { %v3632_v46 = vpop.f32.mrf.mxu0  ;;  %3665 = vmatprep.mubr.msk.f32.mxu1 %vm4100_vm0, %v4099_v0  ;;  %3650 = vmatpush3.msra.mxu1 %v3403_v7 }
 0xb34   : > { %3651 = vmatprep.subr.mxu1 %v4099_v0 }
 0xb35   : > { %3652 = vmatpush3.msra.mxu1 %v3402_v8  ;;  %v3405_v8 = vld [vmem:[#allocation8 + $0x20] sm:$0xff]  }
 0xb36   : > { %3653 = vmatprep.subr.mxu1 %v4099_v0  ;;  %v3407_v10 = vunpack.c.h.bf16 %v3405_v8 }
 0xb37   : > { %3654 = vmatpush3.msra.mxu1 %v3399_v9 }
 0xb38   : > { %3655 = vmatprep.subr.mxu1 %v4099_v0 }
 0xb39   : > { %3656 = vmatpush3.msra.mxu1 %v3398_v12 }
 0xb3a   : > { %3657 = vmatprep.subr.mxu1 %v4099_v0 }
 0xb3b   : > { %3658 = vmatpush3.msra.mxu1 %v3395_v13 }
 0xb3c   : > { %3659 = vmatprep.subr.mxu1 %v4099_v0 }
 0xb3d   : > { %3660 = vmatpush3.msra.mxu1 %v3394_v24 }
 0xb3e   : > { %3661 = vmatprep.subr.mxu1 %v4099_v0 }
 0xb3f   : > { %3662 = vmatpush3.msra.mxu1 %v3391_v26 }
 0xb40   : > { %3663 = vmatprep.subr.mxu1 %v4099_v0 }
 0xb41   : > { %3664 = vmatpush3.msra.mxu1 %v3390_v27 }
 0xb42   : > { %3690 = vmatprep.subr.mxu1 %v4099_v0 }
 0xbf2   : > { %v1571_v49 = vpop.f32.mrf.mxu1 }
 0xbf3   : > { %v1575_v50 = vadd.f32 %v1571_v49, %v1336_v41 }
 0xbf4   : > { %v3637_v51 = vpop.f32.mrf.mxu1 }
 0xbf5   : > { %v1580_v52 = vadd.f32 %v1579_v48, %v1575_v50  ;;  %v3324_v51 = vld [vmem:[%s4777_s2 + $0x38] sm:$0xff] }
 0xbf7   : > { %v1581_v53 = vadd.f32 %v1580_v52, %v4359_v3  ;;  %v3381_v3 = vld [vmem:[%s4780_s5] sm:$0xff]   ;;  %v3323_v52 = vld [vmem:[%s4777_s2 + $0x30] sm:$0xff] }
 0xbf8   : > { %v3383_v63 = vunpack.c.h.bf16 %v3381_v3  ;;  %v3382_v1 = vunpack.c.l.bf16 %v3381_v3 }
 0xbf9   : > { %v1582_v54 = vsel %vm473_vm1, %v1581_v53, 0.0 }
 0xbfa   : > { %1583 = vadd.xlane.f32.xlu1 %v1582_v54  ;;  %3643 = vmatpush3.msra.mxu0 %v3383_v63  ;;  %v3321_v54 = vld [vmem:[%s4777_s2 + $0x20] sm:$0xff] }
 0xbfb   : > { %3644 = vmatprep.subr.mxu0 %v4099_v0 }
 0xbfc   : > { %3645 = vmatpush3.msra.mxu0 %v3382_v1  ;;  %v3451_v1 = vld [vmem:[#allocation8 + $0x28] sm:$0xff]  }
 0xbfd   : > { %3668 = vmatprep.subr.mxu0 %v4099_v0  ;;  %v3411_v5 = vunpack.c.h.bf16 %v3451_v1  ;;  %v3410_v9 = vunpack.c.l.bf16 %v3451_v1 }
 0xc83   : > { %v1584_v55 = vpop.xlane.xlu1 %1583 }
 0xc84   : > { %v1586_v56 = vmul.f32 0.03125, %v1584_v55 }
 0xc86   : > { %v1587_v57 = vsub.f32 %v1581_v53, %v1586_v56  ;;  %v3322_v53 = vld [vmem:[%s4777_s2 + $0x28] sm:$0xff] }
 0xc88   : > { %v1588_v58 = vmul.f32 %v1587_v57, %v1587_v57 }
 0xc8a   : > { %v1589_v59 = vsel %vm473_vm1, %v1588_v58, 0.0  ;;  %v1778_v58 = vsub.s32 4, %v4407_v32 }
 0xc8b   : > { %1590 = vadd.xlane.f32.xlu1 %v1589_v59  ;;  %v1783_v59 = vsub.s32 5, %v4407_v32 }
 0xc8c   : > { %v1779_v60 = vrot.slane %v4405_v31, %v1778_v58 }
 0xc8d   : > { %v1784_v3 = vrot.slane %v4405_v31, %v1783_v59  ;;  %v3406_v31 = vunpack.c.l.bf16 %v3405_v8 }
 0xd14   : > { %v1591_v14 = vpop.xlane.xlu1 %1590 }
 0xd15   : > { %v1592_v15 = vmul.f32 0.03125, %v1591_v14 }
 0xd17   : > { %v1593_v16 = vadd.f32 1e-05, %v1592_v15 }
 0xd19   : > { %3881 = vrsqrt.f32 %v1593_v16  ;;  %v3337_v16 = vld [vmem:[%s4782_s7 + $0x4] sm:$0xf] }
 0xd26   : > { %v3882_v20 = vpop.eup %3881 }
 0xd27   : > { %v1595_v21 = vmul.f32 %v3882_v20, %v1587_v57 }
 0xd29   : > { %v1600_v22 = vmul.f32 %v1599_v19, %v1595_v21  ;;  %v4598_v19 = vunpack.c.l.bf16 %v3337_v16 }
 0xd2b   : > { %v1605_v23 = vadd.f32 %v1604_v11, %v1600_v22  ;;  %v1925_v20 = vrot.slane %v4598_v19, %v4412_v34 }
 0xd2d   : > { %3647 = vmatmul.mubr.msk.f32.vlgmr.msra.gmra.mxu0 %vm473_vm1, %v1605_v23 }
 0xd2e   : > { %3676 = vmatprep.mubr.msk.f32.mxu0 %vm4100_vm0, %v4099_v0  ;;  %3669 = vmatpush3.msra.mxu0 %v3324_v51 }
 0xd2f   : > { %3670 = vmatprep.subr.mxu0 %v4099_v0 }
 0xd30   : > { %3671 = vmatpush3.msra.mxu0 %v3323_v52  ;;  %v3452_v52 = vld [vmem:[#allocation8 + $0x30] sm:$0xff]  }
 0xd31   : > { %3672 = vmatprep.subr.mxu0 %v4099_v0 }
 0xd32   : > { %3673 = vmatpush3.msra.mxu0 %v3322_v53  ;;  %v3414_v53 = vunpack.c.l.bf16 %v3452_v52 }
 0xd33   : > { %3674 = vmatprep.subr.mxu0 %v4099_v0 }
 0xd34   : > { %3675 = vmatpush3.msra.mxu0 %v3321_v54  ;;  %v3415_v54 = vunpack.c.h.bf16 %v3452_v52 }
 0xd35   : > { %3679 = vmatprep.subr.mxu0 %v4099_v0 }
 0xded   : > { %v1679_v33 = vpop.f32.mrf.mxu0 }
 0xdee   : > { %v1680_v35 = vadd.f32 %v1679_v33, %v1609_v30 }
 0xdef   : > { %v3648_v37 = vpop.f32.mrf.mxu0 }
 0xdf0   : > { %v1683_v38 = vmax.f32 %v1680_v35, 0.0 }
 0xdf2   : > { %3666 = vmatmul.mubr.msk.f32.vlgmr.msra.gmra.mxu1 %vm1688_vm3, %v1683_v38 }
 0xdf3   : > { %3692 = vmatprep.mubr.msk.f32.mxu1 %vm4100_vm0, %v4099_v0 }
 0xeb2   : > { %v1758_v41 = vpop.f32.mrf.mxu1 }
 0xeb3   : > { %v1759_v36 = vadd.f32 %v1758_v41, %v1687_v40 }
 0xeb4   : > { %v3667_v42 = vpop.f32.mrf.mxu1 }
 0xeb5   : > { %v1762_v43 = vadd.f32 %v1759_v36, %v1605_v23 }
 0xeb7   : > { %v1763_v44 = vsel %vm473_vm1, %v1762_v43, 0.0 }
 0xeb8   : > { %1764 = vadd.xlane.f32.xlu0 %v1763_v44 }
 0xf41   : > { %v1765_v45 = vpop.xlane.xlu0 %1764 }
 0xf42   : > { %v1766_v46 = vmul.f32 0.03125, %v1765_v45 }
 0xf44   : > { %v1767_v48 = vsub.f32 %v1762_v43, %v1766_v46 }
 0xf46   : > { %v1768_v49 = vmul.f32 %v1767_v48, %v1767_v48 }
 0xf48   : > { %v1769_v50 = vsel %vm473_vm1, %v1768_v49, 0.0 }
 0xf49   : > { %1770 = vadd.xlane.f32.xlu1 %v1769_v50 }
 0xfd2   : > { %v1771_v55 = vpop.xlane.xlu1 %1770 }
 0xfd3   : > { %v1772_v56 = vmul.f32 0.03125, %v1771_v55 }
 0xfd5   : > { %v1773_v57 = vadd.f32 1e-05, %v1772_v56 }
 0xfd7   : > { %3883 = vrsqrt.f32 %v1773_v57 }
 0xfe4   : > { %v3884_v61 = vpop.eup %3883 }
 0xfe5   : > { %v1775_v62 = vmul.f32 %v3884_v61, %v1767_v48 }
 0xfe7   : > { %v1780_v63 = vmul.f32 %v1779_v60, %v1775_v62 }
 0xfe9   : > { %v4571_v2 = vadd.f32 %v1784_v3, %v1780_v63 }
 0xfeb   : > { %v1842_v7 = vadd.f32 %v4571_v2, %v416_v6 }
 0xfed   : > { %3677 = vmatmul.mubr.msk.f32.vlgmr.msra.gmra.mxu0 %vm473_vm1, %v1842_v7 }
 0xfee   : > { %3680 = vmatpush3.msra.mxu0 %v3411_v5  ;;  %3687 = vmatprep.mubr.msk.f32.mxu0 %vm4100_vm0, %v4099_v0 }
 0xfef   : > { %3681 = vmatprep.subr.mxu0 %v4099_v0 }
 0xff0   : > { %3682 = vmatpush3.msra.mxu0 %v3410_v9 }
 0xff1   : > { %3683 = vmatprep.subr.mxu0 %v4099_v0 }
 0xff2   : > { %3684 = vmatpush3.msra.mxu0 %v3407_v10 }
 0xff3   : > { %3685 = vmatprep.subr.mxu0 %v4099_v0 }
 0xff4   : > { %3686 = vmatpush3.msra.mxu0 %v3406_v31 }
 0xff5   : > { %3688 = vmatmul.mubr.msk.f32.vlgmr.msra.gmra.mxu0 %vm473_vm1, %v4571_v2  ;;  %3700 = vmatprep.subr.mxu0 %v4099_v0 }
 0xff6   : > { %3702 = vmatprep.mubr.msk.f32.mxu0 %vm4100_vm0, %v4099_v0 }
0x10ad   : > { %v1918_v6 = vpop.f32.mrf.mxu0 }
0x10ae   : > { %v4587_v12 = vadd.f32 %v3339_v4, %v1918_v6 }
0x10af   : > { %v3678_v13 = vpop.f32.mrf.mxu0 }
0x10b0   : > { %2000 = vrot.lane.b32.xlu1 %v4587_v12, %s4102_s4 }
0x10b4   : > { %2162 = vrot.lane.b32.xlu1 %v4587_v12, %s4101_s3  ;;  %s413_s3 = scalar_lea.vmem [#allocation10], %s3295_s27  ;;  %s4019_s27 = scalar_lea.vmem %s4018_s13, 256 }
0x10b5   : > { %v1995_v14 = vpop.f32.mrf.mxu0  ;;  %s3173_s4 = sshll.u32 %s413_s3, 4  ;;  %s3174_s4 = int_to_ptr.vmem [resolvable:$true] %s3173_s4 }
0x10b6   : > { %v4604_v11 = vadd.f32 %v1995_v14, %v1925_v20  ;;  %p4020_p5 = scmp.lt.s32.totalorder %s3174_s4, %s4018_s13 }
0x10b7   : > { %v3689_v15 = vpop.f32.mrf.mxu0 }
0x10b8   : > { %2160 = vrot.lane.b32.xlu1 %v4587_v12, %s4103_s17 }
0x1122   : > { %v2001_v21 = vpop.permute.xlu1 %2000 }
0x1123   : > { %3691 = vmatpush3.xpose.msk.msra.mxu1 %vm627_vm2, %v2001_v21 }
0x1124   : > { %3695 = vmatprep.subr.mxu1 %v4099_v0 }
0x1126   : > { %3693 = vmatmul.mubr.msk.f32.vlgmr.msra.gmra.mxu1 %vm627_vm2, %v4587_v12  ;;  %v2163_v22 = vpop.permute.xlu1 %2162 }
0x1127   : > { %3696 = vmatpush3.msra.mxu1 %v4604_v11  ;;  %3701 = vmatpush3.xpose.msk.msra.mxu0 %vm627_vm2, %v2163_v22 }
0x1128   : > { %3697 = vmatprep.mubr.msk.f32.mxu1 %vm4100_vm0, %v4099_v0  ;;  %3705 = vmatprep.subr.mxu1 %v4099_v0 }
0x1129   : > { %3710 = vmatprep.subr.mxu0 %v4099_v0 }
0x112a   : > { %v2161_v23 = vpop.permute.xlu1 %2160 }
0x112b   : > { %3703 = vmatmul.mubr.msk.f32.vlgmr.msra.gmra.mxu0 %vm627_vm2, %v2161_v23 }
0x112c   : > { %3712 = vmatprep.mubr.msk.f32.mxu0 %vm4100_vm0, %v4099_v0  ;;  %3711 = vmatpush3.msra.mxu0 %v3415_v54 }
0x112d   : > { %3720 = vmatprep.subr.mxu0 %v4099_v0 }
0x11e6   : > { %v2072_v24 = vpop.f32.mrf.mxu1 }
0x11e7   : > { %v2076_v25 = vsel %vm627_vm2, %v2072_v24, -inf }
0x11e8   : > { %2077 = vmax.xlane.f32.xlu1 %v2076_v25  ;;  %v3694_v26 = vpop.f32.mrf.mxu1 }
0x11eb   : > { %v2234_v27 = vpop.f32.mrf.mxu0 }
0x11ec   : > { %v2238_v28 = vsel %vm627_vm2, %v2234_v27, -inf }
0x11ed   : > { %2239 = vmax.xlane.f32.xlu0 %v2238_v28  ;;  %v3704_v29 = vpop.f32.mrf.mxu0 }
0x11f9   : > { %2472 = vrot.lane.b32.xlu1 %v4587_v12, %s4104_s23 }
0x1271   : > { %v2078_v30 = vpop.xlane.xlu1 %2077 }
0x1272   : > { %v2079_v33 = vsub.f32 %v2072_v24, %v2078_v30 }
0x1274   : > { %v2080_v35 = vmul.f32 1.442695, %v2079_v33 }
0x1275   : > { %v2473_v62 = vpop.permute.xlu1 %2472 }
0x1276   : > { %3885 = vpow2.f32 %v2080_v35  ;;  %v2240_v37 = vpop.xlane.xlu0 %2239 }
0x1277   : > { %v2241_v38 = vsub.f32 %v2234_v27, %v2240_v37 }
0x1279   : > { %v2242_v40 = vmul.f32 1.442695, %v2241_v38 }
0x127b   : > { %3887 = vpow2.f32 %v2242_v40 }
0x1283   : > { %v3886_v41 = vpop.eup %3885 }
0x1284   : > { %v2082_v36 = vsel %vm627_vm2, %v3886_v41, 0.0 }
0x1285   : > { %2083 = vadd.xlane.f32.xlu0 %v2082_v36 }
0x1288   : > { %v3888_v42 = vpop.eup %3887 }
0x1289   : > { %v2244_v43 = vsel %vm627_vm2, %v3888_v42, 0.0 }
0x128a   : > { %2245 = vadd.xlane.f32.xlu0 %v2244_v43 }
0x12a0   : > { %2250 = vrot.lane.b32.xlu0 %v4604_v11, %s4103_s17 }
0x12a4   : > { %2474 = vrot.lane.b32.xlu0 %v4587_v12, %s4105_s18  ;;  %s3171_s18 = scalar_lea.hbm %s4784_s9, %s3361_s0 }
0x130e   : > { %v2084_v44 = vpop.xlane.xlu0 %2083 }
0x130f   : > { %3889 = vrcp.f32 %v2084_v44 }
0x1313   : > { %v2246_v45 = vpop.xlane.xlu0 %2245 }
0x1314   : > { %3891 = vrcp.f32 %v2246_v45 }
0x1317   : > { %v2251_v49 = vpop.permute.xlu0 %2250 }
0x131b   : > { %v2475_v60 = vpop.permute.xlu0 %2474 }
0x131c   : > { %v3890_v46 = vpop.eup %3889 }
0x131d   : > { %v2086_v48 = vmul.f32 %v3890_v46, %v3886_v41 }
0x131f   : > { %3698 = vmatmul.mubr.msk.f32.vlgmr.msra.gmra.mxu1 %vm627_vm2, %v2086_v48 }
0x1320   : > { %3706 = vmatpush3.msra.mxu1 %v2251_v49  ;;  %3707 = vmatprep.mubr.msk.f32.mxu1 %vm4100_vm0, %v4099_v0  ;;  %v2953_v49 = vrot.slane %v4598_v19, %v1578_v47  ;;  %v3455_v47 = vld [vmem:[%s4780_s5 + $0x18] sm:$0xff]  }
0x1321   : > { %v3892_v50 = vpop.eup %3891  ;;  %3715 = vmatprep.subr.mxu1 %v4099_v0 }
0x1322   : > { %v2248_v51 = vmul.f32 %v3892_v50, %v3888_v42 }
0x1324   : > { %3708 = vmatmul.mubr.msk.f32.vlgmr.msra.gmra.mxu1 %vm627_vm2, %v2248_v51 }
0x1325   : > { %3717 = vmatprep.mubr.msk.f32.mxu1 %vm4100_vm0, %v4099_v0  ;;  %3716 = vmatpush3.msra.mxu1 %v3414_v53 }
0x1326   : > { %3725 = vmatprep.subr.mxu1 %v4099_v0 }
0x13df   : > { %v2156_v55 = vpop.f32.mrf.mxu1 }
0x13e0   : > { %3718 = vmatmul.mubr.msk.f32.vlgmr.msra.gmra.mxu1 %vm627_vm2, %v2156_v55 }
0x13e1   : > { %v3699_v56 = vpop.f32.mrf.mxu1  ;;  %3727 = vmatprep.mubr.msk.f32.mxu1 %vm4100_vm0, %v4099_v0 }
0x13e4   : > { %v2322_v57 = vpop.f32.mrf.mxu1 }
0x13e5   : > { %3713 = vmatmul.mubr.msk.f32.vlgmr.msra.gmra.mxu0 %vm627_vm2, %v2322_v57 }
0x13e6   : > { %3721 = vmatpush3.xpose.msk.msra.mxu0 %vm627_vm2, %v2475_v60  ;;  %v3709_v61 = vpop.f32.mrf.mxu1  ;;  %3722 = vmatprep.mubr.msk.f32.mxu0 %vm4100_vm0, %v4099_v0 }
0x13e7   : > { %3730 = vmatprep.subr.mxu0 %v4099_v0 }
0x13e9   : > { %3723 = vmatmul.mubr.msk.f32.vlgmr.msra.gmra.mxu0 %vm627_vm2, %v2473_v62 }
0x13ea   : > { %3732 = vmatprep.mubr.msk.f32.mxu0 %vm4100_vm0, %v4099_v0 }
0x14a0   : > { %v2468_v3 = vpop.f32.mrf.mxu1 }
0x14a2   : > { %v3719_v63 = vpop.f32.mrf.mxu1 }
0x14a3   : > { %v3426_v63 = vunpack.c.l.bf16 %v3455_v47 }
0x14a5   : > { %v2395_v1 = vpop.f32.mrf.mxu0 }
0x14a6   : > { %v2469_v5 = vadd.f32 %v2468_v3, %v2395_v1  ;;  %v3427_v3 = vunpack.c.h.bf16 %v3455_v47 }
0x14a7   : > { %v3714_v7 = vpop.f32.mrf.mxu0 }
0x14a8   : > { %v3459_v7 = vld [vmem:[%s4781_s6 + $0x38] sm:$0xff]  }
0x14a9   : > { %v2546_v8 = vpop.f32.mrf.mxu0 }
0x14aa   : > { %v2550_v9 = vsel %vm627_vm2, %v2546_v8, -inf }
0x14ab   : > { %2551 = vmax.xlane.f32.xlu0 %v2550_v9  ;;  %v3724_v10 = vpop.f32.mrf.mxu0  ;;  %v3443_v9 = vunpack.c.h.bf16 %v3459_v7 }
0x14ac   : > { %v3442_v10 = vunpack.c.l.bf16 %v3459_v7 }
0x14c1   : > { %2561 = vrot.lane.b32.xlu0 %v4604_v11, %s4104_s23 }
0x14c5   : > { %2711 = vrot.lane.b32.xlu0 %v4587_v12, %s4106_s15 }
0x1534   : > { %v2552_v31 = vpop.xlane.xlu0 %2551 }
0x1535   : > { %v2553_v4 = vsub.f32 %v2546_v8, %v2552_v31  ;;  %v3458_v8 = vld [vmem:[%s4781_s6 + $0x30] sm:$0xff]  }
0x1536   : > { %v3439_v31 = vunpack.c.h.bf16 %v3458_v8 }
0x1537   : > { %v2554_v6 = vmul.f32 1.442695, %v2553_v4  ;;  %v3457_v4 = vld [vmem:[%s4781_s6 + $0x28] sm:$0xff]  }
0x1538   : > { %v2562_v13 = vpop.permute.xlu0 %2561 }
0x1539   : > { %3893 = vpow2.f32 %v2554_v6  ;;  %3726 = vmatpush3.msra.mxu1 %v2562_v13  ;;  %v3438_v6 = vunpack.c.l.bf16 %v3458_v8  ;;  %v3435_v13 = vunpack.c.h.bf16 %v3457_v4 }
0x153a   : > { %3735 = vmatprep.subr.mxu1 %v4099_v0 }
0x153c   : > { %v2712_v23 = vpop.permute.xlu0 %2711 }
0x1546   : > { %v3894_v14 = vpop.eup %3893 }
0x1547   : > { %v2556_v15 = vsel %vm627_vm2, %v3894_v14, 0.0 }
0x1548   : > { %2557 = vadd.xlane.f32.xlu1 %v2556_v15 }
0x1559   : > { %2713 = vrot.lane.b32.xlu1 %v4587_v12, %s4107_s24  ;;  %v3453_v12 = vld [vmem:[#allocation8 + $0x38] sm:$0xff]   ;;  %s4013_s24 = scalar_lea.vmem %s3174_s4, 128 }
0x155a   : > { %v3418_v24 = vunpack.c.l.bf16 %v3453_v12  ;;  %v3419_v41 = vunpack.c.h.bf16 %v3453_v12  ;;  %p4014_p12 = scmp.ne.s32.totalorder %s3174_s4, %s4013_s24  ;;  %p4021_p1 = scmp.lt.s32.totalorder %s4019_s27, %s4013_s24 }
0x155c   : > { %3731 = vmatpush3.msra.mxu0 %v3418_v24  ;;  %p4015_p9 = pnand %p4014_p12, %p4813_p3  ;;  %p4022_p4 = por %p4021_p1, %p4020_p5 }
0x155d   : > { %3740 = vmatprep.subr.mxu0 %v4099_v0 }
0x155e   : > { %p4016_p13 = pneg %p4015_p9 }
0x1560   : > { %p4023_p7 = pnand %p4022_p4, %p4016_p13 }
0x15d1   : > { %v2558_v16 = vpop.xlane.xlu1 %2557 }
0x15d2   : > { %3895 = vrcp.f32 %v2558_v16 }
0x15d5   : > { %v2714_v22 = vpop.permute.xlu1 %2713 }
0x15df   : > { %v3896_v20 = vpop.eup %3895 }
0x15e0   : > { %v2560_v21 = vmul.f32 %v3896_v20, %v3894_v14  ;;  %v2972_v20 = vrot.slane %v4598_v19, %v1598_v17 }
0x15e2   : > { %3728 = vmatmul.mubr.msk.f32.vlgmr.msra.gmra.mxu1 %vm627_vm2, %v2560_v21 }
0x15e3   : > { %3736 = vmatpush3.xpose.msk.msra.mxu1 %vm627_vm2, %v2714_v22  ;;  %3737 = vmatprep.mubr.msk.f32.mxu1 %vm4100_vm0, %v4099_v0 }
0x15e4   : > { %3745 = vmatprep.subr.mxu1 %v4099_v0 }
0x15e6   : > { %3738 = vmatmul.mubr.msk.f32.vlgmr.msra.gmra.mxu1 %vm627_vm2, %v2712_v23  ;;  %v2977_v23 = vrot.slane %v4598_v19, %v1603_v18  ;;  %v3338_v18 = vld [vmem:[%s4783_s8 + $0x1] sm:$0x1] }
0x15e7   : > { %3747 = vmatprep.mubr.msk.f32.mxu1 %vm4100_vm0, %v4099_v0  ;;  %3746 = vmatpush3.msra.mxu1 %v3419_v41 }
0x15e8   : > { %3761 = vmatprep.subr.mxu1 %v4099_v0 }
0x16a2   : > { %v2633_v25 = vpop.f32.mrf.mxu1 }
0x16a3   : > { %3733 = vmatmul.mubr.msk.f32.vlgmr.msra.gmra.mxu0 %vm627_vm2, %v2633_v25  ;;  %v3434_v25 = vunpack.c.l.bf16 %v3457_v4 }
0x16a4   : > { %v3729_v26 = vpop.f32.mrf.mxu1  ;;  %3742 = vmatprep.mubr.msk.f32.mxu0 %vm4100_vm0, %v4099_v0 }
0x16a5   : > { %v3456_v26 = vld [vmem:[%s4781_s6 + $0x20] sm:$0xff]  }
0x16a6   : > { %v2785_v27 = vpop.f32.mrf.mxu1  ;;  %v3430_v17 = vunpack.c.l.bf16 %v3456_v26 }
0x16a7   : > { %v2789_v28 = vsel %vm627_vm2, %v2785_v27, -inf }
0x16a8   : > { %2790 = vmax.xlane.f32.xlu0 %v2789_v28  ;;  %v3739_v29 = vpop.f32.mrf.mxu1  ;;  %v1841_v28 = vunpack.c.l.bf16 %v3338_v18 }
0x16aa   : > { %v2982_v29 = vrot.slane %v1841_v28, %v4412_v34 }
0x16be   : > { %2800 = vrot.lane.b32.xlu0 %v4604_v11, %s4106_s15  ;;  %s3160_s15 = scalar_lea.sflag [#allocation4], %s4323_s11 }
0x1731   : > { %v2791_v30 = vpop.xlane.xlu0 %2790 }
0x1732   : > { %v2792_v33 = vsub.f32 %v2785_v27, %v2791_v30  ;;  %v3431_v27 = vunpack.c.h.bf16 %v3456_v26 }
0x1734   : > { %v2793_v35 = vmul.f32 1.442695, %v2792_v33 }
0x1735   : > { %v2801_v37 = vpop.permute.xlu0 %2800 }
0x1736   : > { %3897 = vpow2.f32 %v2793_v35  ;;  %3741 = vmatpush3.msra.mxu0 %v2801_v37 }
0x1737   : > { %3750 = vmatprep.subr.mxu0 %v4099_v0 }
0x1743   : > { %v3898_v38 = vpop.eup %3897 }
0x1744   : > { %v2795_v40 = vsel %vm627_vm2, %v3898_v38, 0.0 }
0x1745   : > { %2796 = vadd.xlane.f32.xlu1 %v2795_v40 }
0x1763   : > { %v2706_v36 = vpop.f32.mrf.mxu0 }
0x1764   : > { %v2710_v42 = vadd.f32 %v2706_v36, %v2469_v5 }
0x1765   : > { %v3734_v43 = vpop.f32.mrf.mxu0 }
0x17ce   : > { %v2797_v11 = vpop.xlane.xlu1 %2796 }
0x17cf   : > { %3899 = vrcp.f32 %v2797_v11 }
0x17dc   : > { %v3900_v44 = vpop.eup %3899 }
0x17dd   : > { %v2799_v45 = vmul.f32 %v3900_v44, %v3898_v38  ;;  %v3060_v38 = vrot.slane %v4598_v19, %v1686_v39 }
0x17df   : > { %3743 = vmatmul.mubr.msk.f32.vlgmr.msra.gmra.mxu0 %vm627_vm2, %v2799_v45 }
0x17e0   : > { %3758 = vmatprep.mubr.msk.f32.mxu0 %vm4100_vm0, %v4099_v0  ;;  %3751 = vmatpush3.msra.mxu0 %v3427_v3 }
0x17e1   : > { %3752 = vmatprep.subr.mxu0 %v4099_v0 }
0x17e2   : > { %3753 = vmatpush3.msra.mxu0 %v3426_v63 }
0x17e3   : > { %3754 = vmatprep.subr.mxu0 %v4099_v0 }
0x189f   : > { %v2872_v46 = vpop.f32.mrf.mxu0 }
0x18a0   : > { %3748 = vmatmul.mubr.msk.f32.vlgmr.msra.gmra.mxu1 %vm627_vm2, %v2872_v46 }
0x18a1   : > { %v3744_v48 = vpop.f32.mrf.mxu0  ;;  %3777 = vmatprep.mubr.msk.f32.mxu1 %vm4100_vm0, %v4099_v0  ;;  %3762 = vmatpush3.msra.mxu1 %v3443_v9 }
0x18a2   : > { %3763 = vmatprep.subr.mxu1 %v4099_v0 }
0x18a3   : > { %3764 = vmatpush3.msra.mxu1 %v3442_v10 }
0x18a4   : > { %3765 = vmatprep.subr.mxu1 %v4099_v0 }
0x18a5   : > { %3766 = vmatpush3.msra.mxu1 %v3439_v31 }
0x18a6   : > { %3767 = vmatprep.subr.mxu1 %v4099_v0 }
0x18a7   : > { %3768 = vmatpush3.msra.mxu1 %v3438_v6 }
0x18a8   : > { %3769 = vmatprep.subr.mxu1 %v4099_v0 }
0x18a9   : > { %3770 = vmatpush3.msra.mxu1 %v3435_v13 }
0x18aa   : > { %3771 = vmatprep.subr.mxu1 %v4099_v0 }
0x18ab   : > { %3772 = vmatpush3.msra.mxu1 %v3434_v25 }
0x18ac   : > { %3773 = vmatprep.subr.mxu1 %v4099_v0 }
0x18ad   : > { %3774 = vmatpush3.msra.mxu1 %v3431_v27 }
0x18ae   : > { %3775 = vmatprep.subr.mxu1 %v4099_v0 }
0x18af   : > { %3776 = vmatpush3.msra.mxu1 %v3430_v17 }
0x1960   : > { %v2945_v50 = vpop.f32.mrf.mxu1 }
0x1961   : > { %v2949_v51 = vadd.f32 %v2945_v50, %v2710_v42 }
0x1962   : > { %v3749_v52 = vpop.f32.mrf.mxu1 }
0x1963   : > { %v2954_v53 = vadd.f32 %v2953_v49, %v2949_v51  ;;  %v3151_v49 = vrot.slane %v4598_v19, %v1778_v58  ;;  %v3156_v52 = vrot.slane %v4598_v19, %v1783_v59 }
0x1965   : > { %v2955_v54 = vadd.f32 %v2954_v53, %v4571_v2  ;;  %v3454_v2 = vld [vmem:[%s4780_s5 + $0x10] sm:$0xff]  }
0x1966   : > { %v3423_v1 = vunpack.c.h.bf16 %v3454_v2  ;;  %v3422_v5 = vunpack.c.l.bf16 %v3454_v2 }
0x1967   : > { %v2956_v55 = vsel %vm473_vm1, %v2955_v54, 0.0 }
0x1968   : > { %2957 = vadd.xlane.f32.xlu1 %v2956_v55  ;;  %3755 = vmatpush3.msra.mxu0 %v3423_v1 }
0x1969   : > { %3756 = vmatprep.subr.mxu0 %v4099_v0 }
0x196a   : > { %3757 = vmatpush3.msra.mxu0 %v3422_v5 }
0x19f1   : > { %v2958_v56 = vpop.xlane.xlu1 %2957 }
0x19f2   : > { %v2959_v57 = vmul.f32 0.03125, %v2958_v56 }
0x19f4   : > { %v2960_v60 = vsub.f32 %v2955_v54, %v2959_v57 }
0x19f6   : > { %v2961_v61 = vmul.f32 %v2960_v60, %v2960_v60 }
0x19f8   : > { %v2962_v62 = vsel %vm473_vm1, %v2961_v61, 0.0 }
0x19f9   : > { %2963 = vadd.xlane.f32.xlu1 %v2962_v62 }
0x1a82   : > { %v2964_v14 = vpop.xlane.xlu1 %2963 }
0x1a83   : > { %v2965_v15 = vmul.f32 0.03125, %v2964_v14 }
0x1a85   : > { %v2966_v16 = vadd.f32 1e-05, %v2965_v15 }
0x1a87   : > { %3901 = vrsqrt.f32 %v2966_v16 }
0x1a94   : > { %v3902_v21 = vpop.eup %3901 }
0x1a95   : > { %v2968_v22 = vmul.f32 %v3902_v21, %v2960_v60 }
0x1a97   : > { %v2973_v12 = vmul.f32 %v2972_v20, %v2968_v22 }
0x1a99   : > { %v2978_v24 = vadd.f32 %v2977_v23, %v2973_v12 }
0x1a9b   : > { %3759 = vmatmul.mubr.msk.f32.vlgmr.msra.gmra.mxu0 %vm473_vm1, %v2978_v24 }
0x1b5b   : > { %v3052_v30 = vpop.f32.mrf.mxu0 }
0x1b5c   : > { %v3053_v33 = vadd.f32 %v3052_v30, %v2982_v29 }
0x1b5d   : > { %v3760_v35 = vpop.f32.mrf.mxu0 }
0x1b5e   : > { %v3056_v37 = vmax.f32 %v3053_v33, 0.0 }
0x1b60   : > { %3778 = vmatmul.mubr.msk.f32.vlgmr.msra.gmra.mxu1 %vm1688_vm3, %v3056_v37 }
0x1c20   : > { %v3130_v40 = vpop.f32.mrf.mxu1 }
0x1c21   : > { %v3131_v0 = vadd.f32 %v3130_v40, %v3060_v38 }
0x1c22   : > { %v3779_v41 = vpop.f32.mrf.mxu1 }
0x1c23   : > { %v3134_v36 = vadd.f32 %v3131_v0, %v2978_v24 }
0x1c25   : > { %v3135_v42 = vsel %vm473_vm1, %v3134_v36, 0.0 }
0x1c26   : > { %3136 = vadd.xlane.f32.xlu0 %v3135_v42 }
0x1caf   : > { %v3137_v34 = vpop.xlane.xlu0 %3136 }
0x1cb0   : > { %v3138_v43 = vmul.f32 0.03125, %v3137_v34 }
0x1cb2   : > { %v3139_v11 = vsub.f32 %v3134_v36, %v3138_v43 }
0x1cb4   : > { %v3140_v44 = vmul.f32 %v3139_v11, %v3139_v11 }
0x1cb6   : > { %v3141_v45 = vsel %vm473_vm1, %v3140_v44, 0.0 }
0x1cb7   : > { %3142 = vadd.xlane.f32.xlu1 %v3141_v45 }
0x1d40   : > { %v3143_v46 = vpop.xlane.xlu1 %3142 }
0x1d41   : > { %v3144_v48 = vmul.f32 0.03125, %v3143_v46 }
0x1d43   : > { %v3145_v39 = vadd.f32 1e-05, %v3144_v48 }
0x1d45   : > { %3903 = vrsqrt.f32 %v3145_v39 }
0x1d52   : > { %v3904_v50 = vpop.eup %3903 }
0x1d53   : > { %v3147_v51 = vmul.f32 %v3904_v50, %v3139_v11 }
0x1d55   : > { %v3152_v53 = vmul.f32 %v3151_v49, %v3147_v51 }
0x1d57   : > { %v3157_v54 = vadd.f32 %v3156_v52, %v3152_v53 }
0x1d59   : > { %3158 = vst.msk [vmem:[%s413_s3] sm:$0xff] %vm473_vm1, %v3157_v54 }
0x1d5a   : > { %4026 = shalt.err (!%p4023_p7)
}
0x1d5b   : > { %s4027_s25 = scalar_lea.hbm %s3171_s18, 128  ;;  %s4031_s28 = scalar_lea.hbm %s4784_s9, 256 }
0x1d5c   : > { %p4028_p10 = scmp.ne.s32.totalorder %s3171_s18, %s4027_s25  ;;  %p4032_p11 = scmp.lt.s32.totalorder %s3171_s18, %s4784_s9 }
0x1d5d   : > { %p4033_p2 = scmp.lt.s32.totalorder %s4031_s28, %s4027_s25 }
0x1d5e   : > { %p4029_p0 = pnand %p4028_p10, %p4813_p3 }
0x1d5f   : > { %p4034_p6 = por %p4033_p2, %p4032_p11 }
0x1d60   : > { %p4030_p8 = pneg %p4029_p0 }
0x1d62   : > { %p4035_p12 = pnand %p4034_p6, %p4030_p8 }
0x1d64   : > { %4038 = shalt.err (!%p4035_p12)
}
0x1d65   : > { %3792 = dma.vmem_to_hbm [thread:$0]  (%p4813_p3), %s3174_s4, 128, %s3171_s18, %s3160_s15  }
0x1d66 PF: > { %s3185_s14 = sand.u32 1, %s4077_s30   ;;  %p4814_p9 = scmp.ne.s32.totalorder %s4795_s16, 0 }
0x1d67   : > { %p4815_p13 = scmp.ge.s32.totalorder %s4089_s12, 2  ;;  %s3186_s0 = scalar_lea.sflag [#allocation4], %s3185_s14 }
0x1d69   : > { %p3809_p5 = pnand %p4815_p13, %p4814_p9 }
0x1d6b   : > { %p3810_p1 = pneg %p3809_p5 }
0x1d6d   : > { %4072 = dma.done.wait (%p3810_p1), %s3186_s0, 128  }
0x1d6e   : > { %4074 = vsyncadd (%p3810_p1), %s3186_s0, 4294967168  ;;  %s4816_s3 = sld [smem:[#allocation16_spill]]  ;;  %p26_p4 = scmp.ge.s32.totalorder %s4231_s21, 4  }
0x1d6f   : > { %s4817_s11 = sld [smem:[#allocation17_spill]]  ;;  %s4818_s30 = smov %s4081_s10 }
0x1d70   : > { %s4820_s12 = smov %s4231_s21  ;;  %28 = sbr.rel (!%p26_p4) target bundleno = 12 (0xc), region = 129 }
0x1d74   : > { %s4819_s10 = smov %s4816_s3 }
0x1d75   :  { %3191 = vsyncpa [#allocation3], 1 }
0x1d76   :  { %3193 = vsyncpa [#allocation3 + $0x1], 1 }
0x1d77   :  { %3194 = vsyncpa [#allocation6], 1 }
0x1d78   :  { %3196 = vsyncpa [#allocation6 + $0x1], 1 }
0x1d79   :  { %3197 = vsyncpa [#allocation9], 1 }
0x1d7a   :  { %3198 = vsyncpa [#allocation4], 1 }
0x1d7b   :  { %3200 = vsyncpa [#allocation4 + $0x1], 1 }

</bundles_post_ra>
